<compile_context>
chip_gen: v7x
topology: tpu7x:2x2x1
jax: 0.10.0
libtpu: 0.0.40
codegen_flags: <defaults>
</compile_context>

<pallas_src>
import functools

import jax
import jax.numpy as jnp
from jax import lax
from jax.experimental import pallas as pl
from jax.experimental.pallas import tpu as pltpu

EPS = 1e-5


def _resnet_adailn_kernel(x_ref, gamma_ref, beta_ref,
                          w1_ref, b1_ref, rho1_ref,
                          w2_ref, b2_ref, rho2_ref,
                          o_ref, rowpad_ref, acc_ref,
                          *, C, H, W, dot_dtype):
    HW = H * W
    TOT = (H + 2) * W + 2         # row-padded, lane-flat image + 2 sentinel lanes

    x = x_ref[...].astype(jnp.float32)            # (C, HW)
    gamma = gamma_ref[...].astype(jnp.float32)    # (C, 1)
    beta = beta_ref[...].astype(jnp.float32)      # (C, 1)

    # Lane-position masks for the reflected W-edges (hoisted, shared by both convs).
    col = lax.broadcasted_iota(jnp.int32, (1, HW), 1) % W
    is_w_first = col == 0
    is_w_last = col == (W - 1)

    def conv3x3(src, w_ref, bias):
        """3x3 conv with reflection padding. src: (C, HW) f32 -> (C, HW) f32."""
        # Row-reflection pad into the lane-flat scratch.  Everything is stored at
        # a +1 lane offset so the dw = -1 / +1 windows below stay in bounds.
        rowpad_ref[:, 1 + W:1 + W + HW] = src                                   # body rows
        rowpad_ref[:, 1:1 + W] = src[:, W:2 * W]                                # top    <- row 1
        rowpad_ref[:, 1 + (H + 1) * W:1 + (H + 2) * W] = \
            src[:, (H - 2) * W:(H - 1) * W]                                     # bottom <- row H-2
        # Sentinel lanes: never selected by the boundary `where`, written only
        # so the scratch is fully deterministic.
        rowpad_ref[:, 0:1] = src[:, 0:1]
        rowpad_ref[:, TOT - 1:TOT] = src[:, HW - 1:HW]

        acc_ref[...] = jnp.broadcast_to(bias, (C, HW))
        for dh in range(3):                       # row offset -1 / 0 / +1
            base = 1 + dh * W
            center = rowpad_ref[:, base:base + HW]
            shift_r = rowpad_ref[:, base - 1:base - 1 + HW]   # elem p = padded[p - 1]
            shift_l = rowpad_ref[:, base + 1:base + 1 + HW]   # elem p = padded[p + 1]
            # Horizontal taps with reflection at w = 0 / w = W-1.
            left = jnp.where(is_w_first, shift_l, shift_r)    # src[h, w-1]
            right = jnp.where(is_w_last, shift_r, shift_l)    # src[h, w+1]
            w_dh = w_ref[dh].astype(dot_dtype)                # (C, 3C): [dw=-1 | dw=0 | dw=+1]
            if C % 8 == 0:
                # Fat-K path (aligned sublane concat): one matmul with K = 3*Cin.
                taps = jnp.concatenate([left, center, right], axis=0).astype(dot_dtype)
                acc_ref[...] += jnp.dot(w_dh, taps, preferred_element_type=jnp.float32)
            else:
                # Tiny / unaligned channel count: three K = Cin matmuls.
                acc_ref[...] += (
                    jnp.dot(w_dh[:, 0:C], left.astype(dot_dtype),
                            preferred_element_type=jnp.float32)
                    + jnp.dot(w_dh[:, C:2 * C], center.astype(dot_dtype),
                              preferred_element_type=jnp.float32)
                    + jnp.dot(w_dh[:, 2 * C:3 * C], right.astype(dot_dtype),
                              preferred_element_type=jnp.float32))
        return acc_ref[...]

    def adailn_affine(v, rho):
        """Fused adaILN: returns (scale, offset), both (C,1), s.t. norm(v) = v*scale + offset."""
        n = float(HW)
        s = jnp.sum(v, axis=1, keepdims=True)                 # (C, 1)
        in_mean = s * (1.0 / n)
        d = v - in_mean
        q = jnp.sum(d * d, axis=1, keepdims=True)             # centered SS per channel
        in_var = q * (1.0 / (n - 1.0))                        # unbiased (torch.var default)
        ln_mean = jnp.sum(s, axis=0, keepdims=True) * (1.0 / (C * n))   # (1, 1)
        dm = in_mean - ln_mean
        ln_ss = jnp.sum(q, axis=0, keepdims=True) + n * jnp.sum(dm * dm, axis=0, keepdims=True)
        ln_var = ln_ss * (1.0 / (C * n - 1.0))                # unbiased
        rs_in = lax.rsqrt(in_var + EPS)                       # (C, 1)
        rs_ln = lax.rsqrt(ln_var + EPS)                       # (1, 1)
        scale = gamma * (rho * rs_in + (1.0 - rho) * rs_ln)
        offset = beta - gamma * (rho * rs_in * in_mean + (1.0 - rho) * rs_ln * ln_mean)
        return scale, offset

    # pad1 -> conv1 -> adaILN1 -> ReLU
    v1 = conv3x3(x, w1_ref, b1_ref[...].astype(jnp.float32))
    s1, t1 = adailn_affine(v1, rho1_ref[...].astype(jnp.float32))
    h = jnp.maximum(v1 * s1 + t1, 0.0)
    # pad2 -> conv2 -> adaILN2 -> residual
    v2 = conv3x3(h, w2_ref, b2_ref[...].astype(jnp.float32))
    s2, t2 = adailn_affine(v2, rho2_ref[...].astype(jnp.float32))
    o_ref[...] = (v2 * s2 + t2 + x).astype(o_ref.dtype)


def resnet_adailn_block(x, gamma, beta, params, *, use_bias=True,
                        dot_dtype=jnp.float32):
    """x: (B,C,H,W); gamma/beta: (B,C); params: w1,b1,rho1,w2,b2,rho2."""
    B, C, H, W = x.shape
    HW = H * W
    f32 = jnp.float32

    x3 = x.reshape(B, C, HW)                      # lane-dense spatial layout
    gamma3 = gamma.reshape(B, C, 1).astype(f32)   # C on the sublane axis
    beta3 = beta.reshape(B, C, 1).astype(f32)

    def reshape_w(w):
        # (Cout, Cin, 3, 3) -> (3, Cout, 3*Cin), indexed [dh, co, dw*Cin + ci].
        # Keeps weights at raw size (no trailing (3,3) tile padding in VMEM).
        return jnp.transpose(w, (2, 0, 3, 1)).reshape(3, C, 3 * C).astype(f32)

    def col(v):
        return v.reshape(C, 1).astype(f32)

    zero_bias = jnp.zeros((C, 1), f32)
    b1c = col(params["b1"]) if use_bias else zero_bias
    b2c = col(params["b2"]) if use_bias else zero_bias

    kernel = functools.partial(_resnet_adailn_kernel, C=C, H=H, W=W,
                               dot_dtype=dot_dtype)
    grid_spec = pltpu.PrefetchScalarGridSpec(
        num_scalar_prefetch=0,
        grid=(B,),
        in_specs=[
            pl.BlockSpec((None, C, HW), lambda b: (b, 0, 0)),     # x
            pl.BlockSpec((None, C, 1), lambda b: (b, 0, 0)),      # gamma
            pl.BlockSpec((None, C, 1), lambda b: (b, 0, 0)),      # beta
            pl.BlockSpec((3, C, 3 * C), lambda b: (0, 0, 0)),     # w1 (tap-major)
            pl.BlockSpec((C, 1), lambda b: (0, 0)),               # b1
            pl.BlockSpec((C, 1), lambda b: (0, 0)),               # rho1
            pl.BlockSpec((3, C, 3 * C), lambda b: (0, 0, 0)),     # w2 (tap-major)
            pl.BlockSpec((C, 1), lambda b: (0, 0)),               # b2
            pl.BlockSpec((C, 1), lambda b: (0, 0)),               # rho2
        ],
        out_specs=pl.BlockSpec((None, C, HW), lambda b: (b, 0, 0)),
        scratch_shapes=[
            pltpu.VMEM((C, (H + 2) * W + 2), jnp.float32),   # row-reflected, lane-flat activation
            pltpu.VMEM((C, HW), jnp.float32),                # conv accumulator
        ],
    )
    out3 = pl.pallas_call(
        kernel,
        grid_spec=grid_spec,
        out_shape=jax.ShapeDtypeStruct((B, C, HW), x.dtype),
        compiler_params=pltpu.CompilerParams(
            dimension_semantics=("parallel",)),   # batch images are independent
    )(x3, gamma3, beta3,
      reshape_w(params["w1"]), b1c, col(params["rho1"]),
      reshape_w(params["w2"]), b2c, col(params["rho2"]))
    return out3.reshape(B, C, H, W)


# ---------------- pure-JAX reference (for correctness check) ----------------

def _reflect_pad_ref(x):
    return jnp.pad(x, ((0, 0), (0, 0), (1, 1), (1, 1)), mode="reflect")


def _ada_iln_ref(v, rho, gamma, beta):
    in_mean = jnp.mean(v, axis=(2, 3), keepdims=True)
    in_var = jnp.var(v, axis=(2, 3), keepdims=True, ddof=1)
    out_in = (v - in_mean) / jnp.sqrt(in_var + EPS)
    ln_mean = jnp.mean(v, axis=(1, 2, 3), keepdims=True)
    ln_var = jnp.var(v, axis=(1, 2, 3), keepdims=True, ddof=1)
    out_ln = (v - ln_mean) / jnp.sqrt(ln_var + EPS)
    r = rho.reshape(1, -1, 1, 1)
    out = r * out_in + (1.0 - r) * out_ln
    return out * gamma[:, :, None, None] + beta[:, :, None, None]


def _block_ref(x, gamma, beta, params, use_bias=True):
    def conv(h, w, b):
        out = lax.conv_general_dilated(
            h, w, (1, 1), "VALID",
            dimension_numbers=("NCHW", "OIHW", "NCHW"))
        if use_bias:
            out = out + b.reshape(1, -1, 1, 1)
        return out

    h = conv(_reflect_pad_ref(x), params["w1"], params["b1"])
    h = _ada_iln_ref(h, params["rho1"], gamma, beta)
    h = jnp.maximum(h, 0.0)
    h = conv(_reflect_pad_ref(h), params["w2"], params["b2"])
    h = _ada_iln_ref(h, params["rho2"], gamma, beta)
    return h + x


if __name__ == "__main__":
    # Second config (C=8) exercises the aligned fat-K (K = 3*Cin) matmul path.
    for (B, C, H, W) in [(2, 4, 16, 16), (2, 8, 16, 16)]:
        key = jax.random.PRNGKey(0)
        ks = jax.random.split(key, 8)
        x = jax.random.normal(ks[0], (B, C, H, W), jnp.float32)
        gamma = jax.random.normal(ks[1], (B, C), jnp.float32)
        beta = jax.random.normal(ks[2], (B, C), jnp.float32)
        params = dict(
            w1=0.1 * jax.random.normal(ks[3], (C, C, 3, 3), jnp.float32),
            b1=0.1 * jax.random.normal(ks[4], (C,), jnp.float32),
            rho1=jnp.full((C,), 0.9, jnp.float32),   # adaILN rho init = 0.9
            w2=0.1 * jax.random.normal(ks[5], (C, C, 3, 3), jnp.float32),
            b2=0.1 * jax.random.normal(ks[6], (C,), jnp.float32),
            rho2=jnp.full((C,), 0.9, jnp.float32),
        )

        out = resnet_adailn_block(x, gamma, beta, params, use_bias=True)
        jax.block_until_ready(out)

        ref = _block_ref(x, gamma, beta, params, use_bias=True)
        err = float(jnp.max(jnp.abs(out - ref)))
        assert jnp.allclose(out, ref, atol=2e-3, rtol=2e-3), \
            f"(C={C}) max abs err {err}"
    print("KERNEL_OK")
</pallas_src>

<mosaic_0001>
module attributes {stable_mosaic.version = 11 : i64} {
  func.func @_resnet_adailn_kernel(%arg0: i32, %arg1: memref<1x4x256xf32, #tpu.memory_space<vmem>>, %arg2: memref<1x4x1xf32, #tpu.memory_space<vmem>>, %arg3: memref<1x4x1xf32, #tpu.memory_space<vmem>>, %arg4: memref<3x4x12xf32, #tpu.memory_space<vmem>>, %arg5: memref<4x1xf32, #tpu.memory_space<vmem>>, %arg6: memref<4x1xf32, #tpu.memory_space<vmem>>, %arg7: memref<3x4x12xf32, #tpu.memory_space<vmem>>, %arg8: memref<4x1xf32, #tpu.memory_space<vmem>>, %arg9: memref<4x1xf32, #tpu.memory_space<vmem>>, %arg10: memref<1x4x256xf32, #tpu.memory_space<vmem>>, %arg11: memref<4x290xf32, #tpu.memory_space<vmem>>, %arg12: memref<4x256xf32, #tpu.memory_space<vmem>>) attributes {dimension_semantics = [#tpu.dimension_semantics<parallel>], iteration_bounds = array<i64: 2>, scalar_prefetch = 0 : i64, scratch_operands = 2 : i64, tpu.core_type = #tpu.core_type<tc>, window_params = [{transform_indices = @transform_0, window_bounds = array<i64: 1, 4, 256>}, {transform_indices = @transform_1, window_bounds = array<i64: 1, 4, 1>}, {transform_indices = @transform_2, window_bounds = array<i64: 1, 4, 1>}, {pipeline_mode = #tpu.pipeline_mode<synchronous>, transform_indices = @transform_3, window_bounds = array<i64: 3, 4, 12>}, {pipeline_mode = #tpu.pipeline_mode<synchronous>, transform_indices = @transform_4, window_bounds = array<i64: 4, 1>}, {pipeline_mode = #tpu.pipeline_mode<synchronous>, transform_indices = @transform_5, window_bounds = array<i64: 4, 1>}, {pipeline_mode = #tpu.pipeline_mode<synchronous>, transform_indices = @transform_6, window_bounds = array<i64: 3, 4, 12>}, {pipeline_mode = #tpu.pipeline_mode<synchronous>, transform_indices = @transform_7, window_bounds = array<i64: 4, 1>}, {pipeline_mode = #tpu.pipeline_mode<synchronous>, transform_indices = @transform_8, window_bounds = array<i64: 4, 1>}, {transform_indices = @transform_9, window_bounds = array<i64: 1, 4, 256>}]} {
    %c0 = arith.constant 0 : index
    %c0_0 = arith.constant 0 : index
    %c0_1 = arith.constant 0 : index
    %0 = vector.load %arg1[%c0, %c0_0, %c0_1] : memref<1x4x256xf32, #tpu.memory_space<vmem>>, vector<1x4x256xf32>
    %1 = vector.shape_cast %0 : vector<1x4x256xf32> to vector<4x256xf32>
    %c0_2 = arith.constant 0 : index
    %c0_3 = arith.constant 0 : index
    %c0_4 = arith.constant 0 : index
    %2 = vector.load %arg2[%c0_2, %c0_3, %c0_4] : memref<1x4x1xf32, #tpu.memory_space<vmem>>, vector<1x4x1xf32>
    %3 = vector.shape_cast %2 : vector<1x4x1xf32> to vector<4x1xf32>
    %c0_5 = arith.constant 0 : index
    %c0_6 = arith.constant 0 : index
    %c0_7 = arith.constant 0 : index
    %4 = vector.load %arg3[%c0_5, %c0_6, %c0_7] : memref<1x4x1xf32, #tpu.memory_space<vmem>>, vector<1x4x1xf32>
    %5 = vector.shape_cast %4 : vector<1x4x1xf32> to vector<4x1xf32>
    %6 = tpu.iota {dimensions = array<i32: 1>} : vector<1x256xi32>
    %c16_i32 = arith.constant 16 : i32
    %c0_i32 = arith.constant 0 : i32
    %7 = arith.cmpi eq, %c16_i32, %c0_i32 : i32
    %c1_i32 = arith.constant 1 : i32
    %8 = arith.select %7, %c1_i32, %c16_i32 : i32
    %9 = vector.broadcast %8 : i32 to vector<1x256xi32>
    %10 = arith.remsi %6, %9 : vector<1x256xi32>
    %c0_i32_8 = arith.constant 0 : i32
    %11 = vector.broadcast %c0_i32_8 : i32 to vector<1x256xi32>
    %12 = arith.cmpi ne, %10, %11 : vector<1x256xi32>
    %c0_i32_9 = arith.constant 0 : i32
    %13 = vector.broadcast %c0_i32_9 : i32 to vector<1x256xi32>
    %14 = arith.cmpi slt, %10, %13 : vector<1x256xi32>
    %c0_i32_10 = arith.constant 0 : i32
    %15 = arith.cmpi slt, %8, %c0_i32_10 : i32
    %16 = vector.broadcast %15 : i1 to vector<1x256xi1>
    %17 = vector.broadcast %16 : vector<1x256xi1> to vector<1x256xi1>
    %18 = arith.xori %14, %17 : vector<1x256xi1>
    %19 = arith.andi %18, %12 : vector<1x256xi1>
    %20 = vector.broadcast %8 : i32 to vector<1x256xi32>
    %21 = arith.addi %10, %20 : vector<1x256xi32>
    %22 = arith.select %19, %21, %10 : vector<1x256xi1>, vector<1x256xi32>
    %c0_i32_11 = arith.constant 0 : i32
    %23 = vector.broadcast %c0_i32_11 : i32 to vector<1x256xi32>
    %24 = arith.cmpi eq, %22, %23 : vector<1x256xi32>
    %c15_i32 = arith.constant 15 : i32
    %25 = vector.broadcast %c15_i32 : i32 to vector<1x256xi32>
    %26 = arith.cmpi eq, %22, %25 : vector<1x256xi32>
    %c0_12 = arith.constant 0 : index
    %c0_13 = arith.constant 0 : index
    %27 = vector.load %arg5[%c0_12, %c0_13] : memref<4x1xf32, #tpu.memory_space<vmem>>, vector<4x1xf32>
    %c0_14 = arith.constant 0 : index
    %c17 = arith.constant 17 : index
    %28 = vector.load %arg11[%c0_14, %c17] : memref<4x290xf32, #tpu.memory_space<vmem>>, vector<4x256xf32>
    tpu.vector_store %arg11[%c0_14, %c17], %1 {strides = array<i32>} : memref<4x290xf32, #tpu.memory_space<vmem>>, vector<4x256xf32>,
    %29 = vector.extract_strided_slice %1 {offsets = [0, 16], sizes = [4, 16], strides = [1, 1]} : vector<4x256xf32> to vector<4x16xf32>
    %c0_15 = arith.constant 0 : index
    %c1 = arith.constant 1 : index
    %30 = vector.load %arg11[%c0_15, %c1] : memref<4x290xf32, #tpu.memory_space<vmem>>, vector<4x16xf32>
    tpu.vector_store %arg11[%c0_15, %c1], %29 {strides = array<i32>} : memref<4x290xf32, #tpu.memory_space<vmem>>, vector<4x16xf32>,
    %31 = vector.extract_strided_slice %1 {offsets = [0, 224], sizes = [4, 16], strides = [1, 1]} : vector<4x256xf32> to vector<4x16xf32>
    %c0_16 = arith.constant 0 : index
    %c273 = arith.constant 273 : index
    %32 = vector.load %arg11[%c0_16, %c273] : memref<4x290xf32, #tpu.memory_space<vmem>>, vector<4x16xf32>
    tpu.vector_store %arg11[%c0_16, %c273], %31 {strides = array<i32>} : memref<4x290xf32, #tpu.memory_space<vmem>>, vector<4x16xf32>,
    %33 = vector.extract_strided_slice %1 {offsets = [0, 0], sizes = [4, 1], strides = [1, 1]} : vector<4x256xf32> to vector<4x1xf32>
    %c0_17 = arith.constant 0 : index
    %c0_18 = arith.constant 0 : index
    %34 = vector.load %arg11[%c0_17, %c0_18] : memref<4x290xf32, #tpu.memory_space<vmem>>, vector<4x1xf32>
    tpu.vector_store %arg11[%c0_17, %c0_18], %33 {strides = array<i32>} : memref<4x290xf32, #tpu.memory_space<vmem>>, vector<4x1xf32>,
    %35 = vector.extract_strided_slice %1 {offsets = [0, 255], sizes = [4, 1], strides = [1, 1]} : vector<4x256xf32> to vector<4x1xf32>
    %c0_19 = arith.constant 0 : index
    %c289 = arith.constant 289 : index
    %36 = vector.load %arg11[%c0_19, %c289] : memref<4x290xf32, #tpu.memory_space<vmem>>, vector<4x1xf32>
    tpu.vector_store %arg11[%c0_19, %c289], %35 {strides = array<i32>} : memref<4x290xf32, #tpu.memory_space<vmem>>, vector<4x1xf32>,
    %37 = vector.shape_cast %27 : vector<4x1xf32> to vector<4x1xf32>
    %38 = vector.broadcast %37 : vector<4x1xf32> to vector<4x256xf32>
    %c0_20 = arith.constant 0 : index
    %c0_21 = arith.constant 0 : index
    %39 = vector.load %arg12[%c0_20, %c0_21] : memref<4x256xf32, #tpu.memory_space<vmem>>, vector<4x256xf32>
    tpu.vector_store %arg12[%c0_20, %c0_21], %38 {strides = array<i32>} : memref<4x256xf32, #tpu.memory_space<vmem>>, vector<4x256xf32>,
    %c0_22 = arith.constant 0 : index
    %c1_23 = arith.constant 1 : index
    %40 = vector.load %arg11[%c0_22, %c1_23] : memref<4x290xf32, #tpu.memory_space<vmem>>, vector<4x256xf32>
    %c0_24 = arith.constant 0 : index
    %c0_25 = arith.constant 0 : index
    %41 = vector.load %arg11[%c0_24, %c0_25] : memref<4x290xf32, #tpu.memory_space<vmem>>, vector<4x256xf32>
    %c0_26 = arith.constant 0 : index
    %c2 = arith.constant 2 : index
    %42 = vector.load %arg11[%c0_26, %c2] : memref<4x290xf32, #tpu.memory_space<vmem>>, vector<4x256xf32>
    %43 = vector.shape_cast %24 : vector<1x256xi1> to vector<1x256xi1>
    %44 = vector.broadcast %43 : vector<1x256xi1> to vector<4x256xi1>
    %45 = arith.select %44, %42, %41 : vector<4x256xi1>, vector<4x256xf32>
    %46 = vector.shape_cast %26 : vector<1x256xi1> to vector<1x256xi1>
    %47 = vector.broadcast %46 : vector<1x256xi1> to vector<4x256xi1>
    %48 = arith.select %47, %41, %42 : vector<4x256xi1>, vector<4x256xf32>
    %c0_27 = arith.constant 0 : index
    %c0_28 = arith.constant 0 : index
    %c0_29 = arith.constant 0 : index
    %49 = vector.load %arg4[%c0_27, %c0_28, %c0_29] : memref<3x4x12xf32, #tpu.memory_space<vmem>>, vector<1x4x12xf32>
    %50 = vector.shape_cast %49 : vector<1x4x12xf32> to vector<4x12xf32>
    %c0_30 = arith.constant 0 : index
    %c0_31 = arith.constant 0 : index
    %51 = vector.load %arg12[%c0_30, %c0_31] : memref<4x256xf32, #tpu.memory_space<vmem>>, vector<4x256xf32>
    %52 = vector.extract_strided_slice %50 {offsets = [0, 0], sizes = [4, 4], strides = [1, 1]} : vector<4x12xf32> to vector<4x4xf32>
    %cst = arith.constant dense<0.000000e+00> : vector<4x256xf32>
    %53 = tpu.matmul %52, %45, %cst {dimension_numbers = #tpu.dot_dimension_numbers<[1], [0], [0], [1], [0, 0, 1, 1], [], []>} : vector<4x4xf32>, vector<4x256xf32>, vector<4x256xf32> -> vector<4x256xf32>
    %54 = vector.extract_strided_slice %50 {offsets = [0, 4], sizes = [4, 4], strides = [1, 1]} : vector<4x12xf32> to vector<4x4xf32>
    %cst_32 = arith.constant dense<0.000000e+00> : vector<4x256xf32>
    %55 = tpu.matmul %54, %40, %cst_32 {dimension_numbers = #tpu.dot_dimension_numbers<[1], [0], [0], [1], [0, 0, 1, 1], [], []>} : vector<4x4xf32>, vector<4x256xf32>, vector<4x256xf32> -> vector<4x256xf32>
    %56 = arith.addf %53, %55 : vector<4x256xf32>
    %57 = vector.extract_strided_slice %50 {offsets = [0, 8], sizes = [4, 4], strides = [1, 1]} : vector<4x12xf32> to vector<4x4xf32>
    %cst_33 = arith.constant dense<0.000000e+00> : vector<4x256xf32>
    %58 = tpu.matmul %57, %48, %cst_33 {dimension_numbers = #tpu.dot_dimension_numbers<[1], [0], [0], [1], [0, 0, 1, 1], [], []>} : vector<4x4xf32>, vector<4x256xf32>, vector<4x256xf32> -> vector<4x256xf32>
    %59 = arith.addf %56, %58 : vector<4x256xf32>
    %60 = arith.addf %51, %59 : vector<4x256xf32>
    %c0_34 = arith.constant 0 : index
    %c0_35 = arith.constant 0 : index
    %61 = vector.load %arg12[%c0_34, %c0_35] : memref<4x256xf32, #tpu.memory_space<vmem>>, vector<4x256xf32>
    tpu.vector_store %arg12[%c0_34, %c0_35], %60 {strides = array<i32>} : memref<4x256xf32, #tpu.memory_space<vmem>>, vector<4x256xf32>,
    %c0_36 = arith.constant 0 : index
    %c17_37 = arith.constant 17 : index
    %62 = vector.load %arg11[%c0_36, %c17_37] : memref<4x290xf32, #tpu.memory_space<vmem>>, vector<4x256xf32>
    %c0_38 = arith.constant 0 : index
    %c16 = arith.constant 16 : index
    %63 = vector.load %arg11[%c0_38, %c16] : memref<4x290xf32, #tpu.memory_space<vmem>>, vector<4x256xf32>
    %c0_39 = arith.constant 0 : index
    %c18 = arith.constant 18 : index
    %64 = vector.load %arg11[%c0_39, %c18] : memref<4x290xf32, #tpu.memory_space<vmem>>, vector<4x256xf32>
    %65 = vector.shape_cast %24 : vector<1x256xi1> to vector<1x256xi1>
    %66 = vector.broadcast %65 : vector<1x256xi1> to vector<4x256xi1>
    %67 = arith.select %66, %64, %63 : vector<4x256xi1>, vector<4x256xf32>
    %68 = vector.shape_cast %26 : vector<1x256xi1> to vector<1x256xi1>
    %69 = vector.broadcast %68 : vector<1x256xi1> to vector<4x256xi1>
    %70 = arith.select %69, %63, %64 : vector<4x256xi1>, vector<4x256xf32>
    %c1_40 = arith.constant 1 : index
    %c0_41 = arith.constant 0 : index
    %c0_42 = arith.constant 0 : index
    %71 = vector.load %arg4[%c1_40, %c0_41, %c0_42] : memref<3x4x12xf32, #tpu.memory_space<vmem>>, vector<1x4x12xf32>
    %72 = vector.shape_cast %71 : vector<1x4x12xf32> to vector<4x12xf32>
    %c0_43 = arith.constant 0 : index
    %c0_44 = arith.constant 0 : index
    %73 = vector.load %arg12[%c0_43, %c0_44] : memref<4x256xf32, #tpu.memory_space<vmem>>, vector<4x256xf32>
    %74 = vector.extract_strided_slice %72 {offsets = [0, 0], sizes = [4, 4], strides = [1, 1]} : vector<4x12xf32> to vector<4x4xf32>
    %cst_45 = arith.constant dense<0.000000e+00> : vector<4x256xf32>
    %75 = tpu.matmul %74, %67, %cst_45 {dimension_numbers = #tpu.dot_dimension_numbers<[1], [0], [0], [1], [0, 0, 1, 1], [], []>} : vector<4x4xf32>, vector<4x256xf32>, vector<4x256xf32> -> vector<4x256xf32>
    %76 = vector.extract_strided_slice %72 {offsets = [0, 4], sizes = [4, 4], strides = [1, 1]} : vector<4x12xf32> to vector<4x4xf32>
    %cst_46 = arith.constant dense<0.000000e+00> : vector<4x256xf32>
    %77 = tpu.matmul %76, %62, %cst_46 {dimension_numbers = #tpu.dot_dimension_numbers<[1], [0], [0], [1], [0, 0, 1, 1], [], []>} : vector<4x4xf32>, vector<4x256xf32>, vector<4x256xf32> -> vector<4x256xf32>
    %78 = arith.addf %75, %77 : vector<4x256xf32>
    %79 = vector.extract_strided_slice %72 {offsets = [0, 8], sizes = [4, 4], strides = [1, 1]} : vector<4x12xf32> to vector<4x4xf32>
    %cst_47 = arith.constant dense<0.000000e+00> : vector<4x256xf32>
    %80 = tpu.matmul %79, %70, %cst_47 {dimension_numbers = #tpu.dot_dimension_numbers<[1], [0], [0], [1], [0, 0, 1, 1], [], []>} : vector<4x4xf32>, vector<4x256xf32>, vector<4x256xf32> -> vector<4x256xf32>
    %81 = arith.addf %78, %80 : vector<4x256xf32>
    %82 = arith.addf %73, %81 : vector<4x256xf32>
    %c0_48 = arith.constant 0 : index
    %c0_49 = arith.constant 0 : index
    %83 = vector.load %arg12[%c0_48, %c0_49] : memref<4x256xf32, #tpu.memory_space<vmem>>, vector<4x256xf32>
    tpu.vector_store %arg12[%c0_48, %c0_49], %82 {strides = array<i32>} : memref<4x256xf32, #tpu.memory_space<vmem>>, vector<4x256xf32>,
    %c0_50 = arith.constant 0 : index
    %c33 = arith.constant 33 : index
    %84 = vector.load %arg11[%c0_50, %c33] : memref<4x290xf32, #tpu.memory_space<vmem>>, vector<4x256xf32>
    %c0_51 = arith.constant 0 : index
    %c32 = arith.constant 32 : index
    %85 = vector.load %arg11[%c0_51, %c32] : memref<4x290xf32, #tpu.memory_space<vmem>>, vector<4x256xf32>
    %c0_52 = arith.constant 0 : index
    %c34 = arith.constant 34 : index
    %86 = vector.load %arg11[%c0_52, %c34] : memref<4x290xf32, #tpu.memory_space<vmem>>, vector<4x256xf32>
    %87 = vector.shape_cast %24 : vector<1x256xi1> to vector<1x256xi1>
    %88 = vector.broadcast %87 : vector<1x256xi1> to vector<4x256xi1>
    %89 = arith.select %88, %86, %85 : vector<4x256xi1>, vector<4x256xf32>
    %90 = vector.shape_cast %26 : vector<1x256xi1> to vector<1x256xi1>
    %91 = vector.broadcast %90 : vector<1x256xi1> to vector<4x256xi1>
    %92 = arith.select %91, %85, %86 : vector<4x256xi1>, vector<4x256xf32>
    %c2_53 = arith.constant 2 : index
    %c0_54 = arith.constant 0 : index
    %c0_55 = arith.constant 0 : index
    %93 = vector.load %arg4[%c2_53, %c0_54, %c0_55] : memref<3x4x12xf32, #tpu.memory_space<vmem>>, vector<1x4x12xf32>
    %94 = vector.shape_cast %93 : vector<1x4x12xf32> to vector<4x12xf32>
    %c0_56 = arith.constant 0 : index
    %c0_57 = arith.constant 0 : index
    %95 = vector.load %arg12[%c0_56, %c0_57] : memref<4x256xf32, #tpu.memory_space<vmem>>, vector<4x256xf32>
    %96 = vector.extract_strided_slice %94 {offsets = [0, 0], sizes = [4, 4], strides = [1, 1]} : vector<4x12xf32> to vector<4x4xf32>
    %cst_58 = arith.constant dense<0.000000e+00> : vector<4x256xf32>
    %97 = tpu.matmul %96, %89, %cst_58 {dimension_numbers = #tpu.dot_dimension_numbers<[1], [0], [0], [1], [0, 0, 1, 1], [], []>} : vector<4x4xf32>, vector<4x256xf32>, vector<4x256xf32> -> vector<4x256xf32>
    %98 = vector.extract_strided_slice %94 {offsets = [0, 4], sizes = [4, 4], strides = [1, 1]} : vector<4x12xf32> to vector<4x4xf32>
    %cst_59 = arith.constant dense<0.000000e+00> : vector<4x256xf32>
    %99 = tpu.matmul %98, %84, %cst_59 {dimension_numbers = #tpu.dot_dimension_numbers<[1], [0], [0], [1], [0, 0, 1, 1], [], []>} : vector<4x4xf32>, vector<4x256xf32>, vector<4x256xf32> -> vector<4x256xf32>
    %100 = arith.addf %97, %99 : vector<4x256xf32>
    %101 = vector.extract_strided_slice %94 {offsets = [0, 8], sizes = [4, 4], strides = [1, 1]} : vector<4x12xf32> to vector<4x4xf32>
    %cst_60 = arith.constant dense<0.000000e+00> : vector<4x256xf32>
    %102 = tpu.matmul %101, %92, %cst_60 {dimension_numbers = #tpu.dot_dimension_numbers<[1], [0], [0], [1], [0, 0, 1, 1], [], []>} : vector<4x4xf32>, vector<4x256xf32>, vector<4x256xf32> -> vector<4x256xf32>
    %103 = arith.addf %100, %102 : vector<4x256xf32>
    %104 = arith.addf %95, %103 : vector<4x256xf32>
    %c0_61 = arith.constant 0 : index
    %c0_62 = arith.constant 0 : index
    %105 = vector.load %arg12[%c0_61, %c0_62] : memref<4x256xf32, #tpu.memory_space<vmem>>, vector<4x256xf32>
    tpu.vector_store %arg12[%c0_61, %c0_62], %104 {strides = array<i32>} : memref<4x256xf32, #tpu.memory_space<vmem>>, vector<4x256xf32>,
    %c0_63 = arith.constant 0 : index
    %c0_64 = arith.constant 0 : index
    %106 = vector.load %arg12[%c0_63, %c0_64] : memref<4x256xf32, #tpu.memory_space<vmem>>, vector<4x256xf32>
    %c0_65 = arith.constant 0 : index
    %c0_66 = arith.constant 0 : index
    %107 = vector.load %arg6[%c0_65, %c0_66] : memref<4x1xf32, #tpu.memory_space<vmem>>, vector<4x1xf32>
    %cst_67 = arith.constant dense<0.000000e+00> : vector<4xf32>
    %108 = vector.multi_reduction <add>, %106, %cst_67 [1] : vector<4x256xf32> to vector<4xf32>
    %109 = vector.shape_cast %108 : vector<4xf32> to vector<4x1xf32>
    %cst_68 = arith.constant 3.906250e-03 : f32
    %110 = vector.broadcast %cst_68 : f32 to vector<4x1xf32>
    %111 = arith.mulf %109, %110 : vector<4x1xf32>
    %112 = vector.broadcast %111 : vector<4x1xf32> to vector<4x256xf32>
    %113 = arith.subf %106, %112 : vector<4x256xf32>
    %114 = arith.mulf %113, %113 : vector<4x256xf32>
    %cst_69 = arith.constant dense<0.000000e+00> : vector<4xf32>
    %115 = vector.multi_reduction <add>, %114, %cst_69 [1] : vector<4x256xf32> to vector<4xf32>
    %116 = vector.shape_cast %115 : vector<4xf32> to vector<4x1xf32>
    %cst_70 = arith.constant 0.00392156886 : f32
    %117 = vector.broadcast %cst_70 : f32 to vector<4x1xf32>
    %118 = arith.mulf %116, %117 : vector<4x1xf32>
    %cst_71 = arith.constant dense<0.000000e+00> : vector<1xf32>
    %119 = vector.multi_reduction <add>, %109, %cst_71 [0] : vector<4x1xf32> to vector<1xf32>
    %120 = vector.shape_cast %119 : vector<1xf32> to vector<1x1xf32>
    %cst_72 = arith.constant 9.765625E-4 : f32
    %121 = vector.broadcast %cst_72 : f32 to vector<1x1xf32>
    %122 = arith.mulf %120, %121 : vector<1x1xf32>
    %123 = vector.broadcast %122 : vector<1x1xf32> to vector<4x1xf32>
    %124 = arith.subf %111, %123 : vector<4x1xf32>
    %cst_73 = arith.constant dense<0.000000e+00> : vector<1xf32>
    %125 = vector.multi_reduction <add>, %116, %cst_73 [0] : vector<4x1xf32> to vector<1xf32>
    %126 = vector.shape_cast %125 : vector<1xf32> to vector<1x1xf32>
    %127 = arith.mulf %124, %124 : vector<4x1xf32>
    %cst_74 = arith.constant dense<0.000000e+00> : vector<1xf32>
    %128 = vector.multi_reduction <add>, %127, %cst_74 [0] : vector<4x1xf32> to vector<1xf32>
    %129 = vector.shape_cast %128 : vector<1xf32> to vector<1x1xf32>
    %cst_75 = arith.constant 2.560000e+02 : f32
    %130 = vector.broadcast %cst_75 : f32 to vector<1x1xf32>
    %131 = arith.mulf %130, %129 : vector<1x1xf32>
    %132 = arith.addf %126, %131 : vector<1x1xf32>
    %cst_76 = arith.constant 9.77517105E-4 : f32
    %133 = vector.broadcast %cst_76 : f32 to vector<1x1xf32>
    %134 = arith.mulf %132, %133 : vector<1x1xf32>
    %cst_77 = arith.constant 9.99999974E-6 : f32
    %135 = vector.broadcast %cst_77 : f32 to vector<4x1xf32>
    %136 = arith.addf %118, %135 : vector<4x1xf32>
    %137 = math.rsqrt %136 : vector<4x1xf32>
    %cst_78 = arith.constant 9.99999974E-6 : f32
    %138 = vector.broadcast %cst_78 : f32 to vector<1x1xf32>
    %139 = arith.addf %134, %138 : vector<1x1xf32>
    %140 = math.rsqrt %139 : vector<1x1xf32>
    %141 = arith.mulf %107, %137 : vector<4x1xf32>
    %cst_79 = arith.constant 1.000000e+00 : f32
    %142 = vector.broadcast %cst_79 : f32 to vector<4x1xf32>
    %143 = arith.subf %142, %107 : vector<4x1xf32>
    %144 = vector.broadcast %140 : vector<1x1xf32> to vector<4x1xf32>
    %145 = arith.mulf %143, %144 : vector<4x1xf32>
    %146 = arith.addf %141, %145 : vector<4x1xf32>
    %147 = arith.mulf %3, %146 : vector<4x1xf32>
    %148 = arith.mulf %107, %137 : vector<4x1xf32>
    %149 = arith.mulf %148, %111 : vector<4x1xf32>
    %cst_80 = arith.constant 1.000000e+00 : f32
    %150 = vector.broadcast %cst_80 : f32 to vector<4x1xf32>
    %151 = arith.subf %150, %107 : vector<4x1xf32>
    %152 = vector.broadcast %140 : vector<1x1xf32> to vector<4x1xf32>
    %153 = arith.mulf %151, %152 : vector<4x1xf32>
    %154 = vector.broadcast %122 : vector<1x1xf32> to vector<4x1xf32>
    %155 = arith.mulf %153, %154 : vector<4x1xf32>
    %156 = arith.addf %149, %155 : vector<4x1xf32>
    %157 = arith.mulf %3, %156 : vector<4x1xf32>
    %158 = arith.subf %5, %157 : vector<4x1xf32>
    %159 = vector.broadcast %147 : vector<4x1xf32> to vector<4x256xf32>
    %160 = arith.mulf %106, %159 : vector<4x256xf32>
    %161 = vector.broadcast %158 : vector<4x1xf32> to vector<4x256xf32>
    %162 = arith.addf %160, %161 : vector<4x256xf32>
    %cst_81 = arith.constant 0.000000e+00 : f32
    %163 = vector.broadcast %cst_81 : f32 to vector<4x256xf32>
    %164 = arith.maximumf %162, %163 : vector<4x256xf32>
    %c0_82 = arith.constant 0 : index
    %c0_83 = arith.constant 0 : index
    %165 = vector.load %arg8[%c0_82, %c0_83] : memref<4x1xf32, #tpu.memory_space<vmem>>, vector<4x1xf32>
    %c0_84 = arith.constant 0 : index
    %c17_85 = arith.constant 17 : index
    %166 = vector.load %arg11[%c0_84, %c17_85] : memref<4x290xf32, #tpu.memory_space<vmem>>, vector<4x256xf32>
    tpu.vector_store %arg11[%c0_84, %c17_85], %164 {strides = array<i32>} : memref<4x290xf32, #tpu.memory_space<vmem>>, vector<4x256xf32>,
    %167 = vector.extract_strided_slice %164 {offsets = [0, 16], sizes = [4, 16], strides = [1, 1]} : vector<4x256xf32> to vector<4x16xf32>
    %c0_86 = arith.constant 0 : index
    %c1_87 = arith.constant 1 : index
    %168 = vector.load %arg11[%c0_86, %c1_87] : memref<4x290xf32, #tpu.memory_space<vmem>>, vector<4x16xf32>
    tpu.vector_store %arg11[%c0_86, %c1_87], %167 {strides = array<i32>} : memref<4x290xf32, #tpu.memory_space<vmem>>, vector<4x16xf32>,
    %169 = vector.extract_strided_slice %164 {offsets = [0, 224], sizes = [4, 16], strides = [1, 1]} : vector<4x256xf32> to vector<4x16xf32>
    %c0_88 = arith.constant 0 : index
    %c273_89 = arith.constant 273 : index
    %170 = vector.load %arg11[%c0_88, %c273_89] : memref<4x290xf32, #tpu.memory_space<vmem>>, vector<4x16xf32>
    tpu.vector_store %arg11[%c0_88, %c273_89], %169 {strides = array<i32>} : memref<4x290xf32, #tpu.memory_space<vmem>>, vector<4x16xf32>,
    %171 = vector.extract_strided_slice %164 {offsets = [0, 0], sizes = [4, 1], strides = [1, 1]} : vector<4x256xf32> to vector<4x1xf32>
    %c0_90 = arith.constant 0 : index
    %c0_91 = arith.constant 0 : index
    %172 = vector.load %arg11[%c0_90, %c0_91] : memref<4x290xf32, #tpu.memory_space<vmem>>, vector<4x1xf32>
    tpu.vector_store %arg11[%c0_90, %c0_91], %171 {strides = array<i32>} : memref<4x290xf32, #tpu.memory_space<vmem>>, vector<4x1xf32>,
    %173 = vector.extract_strided_slice %164 {offsets = [0, 255], sizes = [4, 1], strides = [1, 1]} : vector<4x256xf32> to vector<4x1xf32>
    %c0_92 = arith.constant 0 : index
    %c289_93 = arith.constant 289 : index
    %174 = vector.load %arg11[%c0_92, %c289_93] : memref<4x290xf32, #tpu.memory_space<vmem>>, vector<4x1xf32>
    tpu.vector_store %arg11[%c0_92, %c289_93], %173 {strides = array<i32>} : memref<4x290xf32, #tpu.memory_space<vmem>>, vector<4x1xf32>,
    %175 = vector.shape_cast %165 : vector<4x1xf32> to vector<4x1xf32>
    %176 = vector.broadcast %175 : vector<4x1xf32> to vector<4x256xf32>
    %c0_94 = arith.constant 0 : index
    %c0_95 = arith.constant 0 : index
    %177 = vector.load %arg12[%c0_94, %c0_95] : memref<4x256xf32, #tpu.memory_space<vmem>>, vector<4x256xf32>
    tpu.vector_store %arg12[%c0_94, %c0_95], %176 {strides = array<i32>} : memref<4x256xf32, #tpu.memory_space<vmem>>, vector<4x256xf32>,
    %c0_96 = arith.constant 0 : index
    %c1_97 = arith.constant 1 : index
    %178 = vector.load %arg11[%c0_96, %c1_97] : memref<4x290xf32, #tpu.memory_space<vmem>>, vector<4x256xf32>
    %c0_98 = arith.constant 0 : index
    %c0_99 = arith.constant 0 : index
    %179 = vector.load %arg11[%c0_98, %c0_99] : memref<4x290xf32, #tpu.memory_space<vmem>>, vector<4x256xf32>
    %c0_100 = arith.constant 0 : index
    %c2_101 = arith.constant 2 : index
    %180 = vector.load %arg11[%c0_100, %c2_101] : memref<4x290xf32, #tpu.memory_space<vmem>>, vector<4x256xf32>
    %181 = vector.shape_cast %24 : vector<1x256xi1> to vector<1x256xi1>
    %182 = vector.broadcast %181 : vector<1x256xi1> to vector<4x256xi1>
    %183 = arith.select %182, %180, %179 : vector<4x256xi1>, vector<4x256xf32>
    %184 = vector.shape_cast %26 : vector<1x256xi1> to vector<1x256xi1>
    %185 = vector.broadcast %184 : vector<1x256xi1> to vector<4x256xi1>
    %186 = arith.select %185, %179, %180 : vector<4x256xi1>, vector<4x256xf32>
    %c0_102 = arith.constant 0 : index
    %c0_103 = arith.constant 0 : index
    %c0_104 = arith.constant 0 : index
    %187 = vector.load %arg7[%c0_102, %c0_103, %c0_104] : memref<3x4x12xf32, #tpu.memory_space<vmem>>, vector<1x4x12xf32>
    %188 = vector.shape_cast %187 : vector<1x4x12xf32> to vector<4x12xf32>
    %c0_105 = arith.constant 0 : index
    %c0_106 = arith.constant 0 : index
    %189 = vector.load %arg12[%c0_105, %c0_106] : memref<4x256xf32, #tpu.memory_space<vmem>>, vector<4x256xf32>
    %190 = vector.extract_strided_slice %188 {offsets = [0, 0], sizes = [4, 4], strides = [1, 1]} : vector<4x12xf32> to vector<4x4xf32>
    %cst_107 = arith.constant dense<0.000000e+00> : vector<4x256xf32>
    %191 = tpu.matmul %190, %183, %cst_107 {dimension_numbers = #tpu.dot_dimension_numbers<[1], [0], [0], [1], [0, 0, 1, 1], [], []>} : vector<4x4xf32>, vector<4x256xf32>, vector<4x256xf32> -> vector<4x256xf32>
    %192 = vector.extract_strided_slice %188 {offsets = [0, 4], sizes = [4, 4], strides = [1, 1]} : vector<4x12xf32> to vector<4x4xf32>
    %cst_108 = arith.constant dense<0.000000e+00> : vector<4x256xf32>
    %193 = tpu.matmul %192, %178, %cst_108 {dimension_numbers = #tpu.dot_dimension_numbers<[1], [0], [0], [1], [0, 0, 1, 1], [], []>} : vector<4x4xf32>, vector<4x256xf32>, vector<4x256xf32> -> vector<4x256xf32>
    %194 = arith.addf %191, %193 : vector<4x256xf32>
    %195 = vector.extract_strided_slice %188 {offsets = [0, 8], sizes = [4, 4], strides = [1, 1]} : vector<4x12xf32> to vector<4x4xf32>
    %cst_109 = arith.constant dense<0.000000e+00> : vector<4x256xf32>
    %196 = tpu.matmul %195, %186, %cst_109 {dimension_numbers = #tpu.dot_dimension_numbers<[1], [0], [0], [1], [0, 0, 1, 1], [], []>} : vector<4x4xf32>, vector<4x256xf32>, vector<4x256xf32> -> vector<4x256xf32>
    %197 = arith.addf %194, %196 : vector<4x256xf32>
    %198 = arith.addf %189, %197 : vector<4x256xf32>
    %c0_110 = arith.constant 0 : index
    %c0_111 = arith.constant 0 : index
    %199 = vector.load %arg12[%c0_110, %c0_111] : memref<4x256xf32, #tpu.memory_space<vmem>>, vector<4x256xf32>
    tpu.vector_store %arg12[%c0_110, %c0_111], %198 {strides = array<i32>} : memref<4x256xf32, #tpu.memory_space<vmem>>, vector<4x256xf32>,
    %c0_112 = arith.constant 0 : index
    %c17_113 = arith.constant 17 : index
    %200 = vector.load %arg11[%c0_112, %c17_113] : memref<4x290xf32, #tpu.memory_space<vmem>>, vector<4x256xf32>
    %c0_114 = arith.constant 0 : index
    %c16_115 = arith.constant 16 : index
    %201 = vector.load %arg11[%c0_114, %c16_115] : memref<4x290xf32, #tpu.memory_space<vmem>>, vector<4x256xf32>
    %c0_116 = arith.constant 0 : index
    %c18_117 = arith.constant 18 : index
    %202 = vector.load %arg11[%c0_116, %c18_117] : memref<4x290xf32, #tpu.memory_space<vmem>>, vector<4x256xf32>
    %203 = vector.shape_cast %24 : vector<1x256xi1> to vector<1x256xi1>
    %204 = vector.broadcast %203 : vector<1x256xi1> to vector<4x256xi1>
    %205 = arith.select %204, %202, %201 : vector<4x256xi1>, vector<4x256xf32>
    %206 = vector.shape_cast %26 : vector<1x256xi1> to vector<1x256xi1>
    %207 = vector.broadcast %206 : vector<1x256xi1> to vector<4x256xi1>
    %208 = arith.select %207, %201, %202 : vector<4x256xi1>, vector<4x256xf32>
    %c1_118 = arith.constant 1 : index
    %c0_119 = arith.constant 0 : index
    %c0_120 = arith.constant 0 : index
    %209 = vector.load %arg7[%c1_118, %c0_119, %c0_120] : memref<3x4x12xf32, #tpu.memory_space<vmem>>, vector<1x4x12xf32>
    %210 = vector.shape_cast %209 : vector<1x4x12xf32> to vector<4x12xf32>
    %c0_121 = arith.constant 0 : index
    %c0_122 = arith.constant 0 : index
    %211 = vector.load %arg12[%c0_121, %c0_122] : memref<4x256xf32, #tpu.memory_space<vmem>>, vector<4x256xf32>
    %212 = vector.extract_strided_slice %210 {offsets = [0, 0], sizes = [4, 4], strides = [1, 1]} : vector<4x12xf32> to vector<4x4xf32>
    %cst_123 = arith.constant dense<0.000000e+00> : vector<4x256xf32>
    %213 = tpu.matmul %212, %205, %cst_123 {dimension_numbers = #tpu.dot_dimension_numbers<[1], [0], [0], [1], [0, 0, 1, 1], [], []>} : vector<4x4xf32>, vector<4x256xf32>, vector<4x256xf32> -> vector<4x256xf32>
    %214 = vector.extract_strided_slice %210 {offsets = [0, 4], sizes = [4, 4], strides = [1, 1]} : vector<4x12xf32> to vector<4x4xf32>
    %cst_124 = arith.constant dense<0.000000e+00> : vector<4x256xf32>
    %215 = tpu.matmul %214, %200, %cst_124 {dimension_numbers = #tpu.dot_dimension_numbers<[1], [0], [0], [1], [0, 0, 1, 1], [], []>} : vector<4x4xf32>, vector<4x256xf32>, vector<4x256xf32> -> vector<4x256xf32>
    %216 = arith.addf %213, %215 : vector<4x256xf32>
    %217 = vector.extract_strided_slice %210 {offsets = [0, 8], sizes = [4, 4], strides = [1, 1]} : vector<4x12xf32> to vector<4x4xf32>
    %cst_125 = arith.constant dense<0.000000e+00> : vector<4x256xf32>
    %218 = tpu.matmul %217, %208, %cst_125 {dimension_numbers = #tpu.dot_dimension_numbers<[1], [0], [0], [1], [0, 0, 1, 1], [], []>} : vector<4x4xf32>, vector<4x256xf32>, vector<4x256xf32> -> vector<4x256xf32>
    %219 = arith.addf %216, %218 : vector<4x256xf32>
    %220 = arith.addf %211, %219 : vector<4x256xf32>
    %c0_126 = arith.constant 0 : index
    %c0_127 = arith.constant 0 : index
    %221 = vector.load %arg12[%c0_126, %c0_127] : memref<4x256xf32, #tpu.memory_space<vmem>>, vector<4x256xf32>
    tpu.vector_store %arg12[%c0_126, %c0_127], %220 {strides = array<i32>} : memref<4x256xf32, #tpu.memory_space<vmem>>, vector<4x256xf32>,
    %c0_128 = arith.constant 0 : index
    %c33_129 = arith.constant 33 : index
    %222 = vector.load %arg11[%c0_128, %c33_129] : memref<4x290xf32, #tpu.memory_space<vmem>>, vector<4x256xf32>
    %c0_130 = arith.constant 0 : index
    %c32_131 = arith.constant 32 : index
    %223 = vector.load %arg11[%c0_130, %c32_131] : memref<4x290xf32, #tpu.memory_space<vmem>>, vector<4x256xf32>
    %c0_132 = arith.constant 0 : index
    %c34_133 = arith.constant 34 : index
    %224 = vector.load %arg11[%c0_132, %c34_133] : memref<4x290xf32, #tpu.memory_space<vmem>>, vector<4x256xf32>
    %225 = vector.shape_cast %24 : vector<1x256xi1> to vector<1x256xi1>
    %226 = vector.broadcast %225 : vector<1x256xi1> to vector<4x256xi1>
    %227 = arith.select %226, %224, %223 : vector<4x256xi1>, vector<4x256xf32>
    %228 = vector.shape_cast %26 : vector<1x256xi1> to vector<1x256xi1>
    %229 = vector.broadcast %228 : vector<1x256xi1> to vector<4x256xi1>
    %230 = arith.select %229, %223, %224 : vector<4x256xi1>, vector<4x256xf32>
    %c2_134 = arith.constant 2 : index
    %c0_135 = arith.constant 0 : index
    %c0_136 = arith.constant 0 : index
    %231 = vector.load %arg7[%c2_134, %c0_135, %c0_136] : memref<3x4x12xf32, #tpu.memory_space<vmem>>, vector<1x4x12xf32>
    %232 = vector.shape_cast %231 : vector<1x4x12xf32> to vector<4x12xf32>
    %c0_137 = arith.constant 0 : index
    %c0_138 = arith.constant 0 : index
    %233 = vector.load %arg12[%c0_137, %c0_138] : memref<4x256xf32, #tpu.memory_space<vmem>>, vector<4x256xf32>
    %234 = vector.extract_strided_slice %232 {offsets = [0, 0], sizes = [4, 4], strides = [1, 1]} : vector<4x12xf32> to vector<4x4xf32>
    %cst_139 = arith.constant dense<0.000000e+00> : vector<4x256xf32>
    %235 = tpu.matmul %234, %227, %cst_139 {dimension_numbers = #tpu.dot_dimension_numbers<[1], [0], [0], [1], [0, 0, 1, 1], [], []>} : vector<4x4xf32>, vector<4x256xf32>, vector<4x256xf32> -> vector<4x256xf32>
    %236 = vector.extract_strided_slice %232 {offsets = [0, 4], sizes = [4, 4], strides = [1, 1]} : vector<4x12xf32> to vector<4x4xf32>
    %cst_140 = arith.constant dense<0.000000e+00> : vector<4x256xf32>
    %237 = tpu.matmul %236, %222, %cst_140 {dimension_numbers = #tpu.dot_dimension_numbers<[1], [0], [0], [1], [0, 0, 1, 1], [], []>} : vector<4x4xf32>, vector<4x256xf32>, vector<4x256xf32> -> vector<4x256xf32>
    %238 = arith.addf %235, %237 : vector<4x256xf32>
    %239 = vector.extract_strided_slice %232 {offsets = [0, 8], sizes = [4, 4], strides = [1, 1]} : vector<4x12xf32> to vector<4x4xf32>
    %cst_141 = arith.constant dense<0.000000e+00> : vector<4x256xf32>
    %240 = tpu.matmul %239, %230, %cst_141 {dimension_numbers = #tpu.dot_dimension_numbers<[1], [0], [0], [1], [0, 0, 1, 1], [], []>} : vector<4x4xf32>, vector<4x256xf32>, vector<4x256xf32> -> vector<4x256xf32>
    %241 = arith.addf %238, %240 : vector<4x256xf32>
    %242 = arith.addf %233, %241 : vector<4x256xf32>
    %c0_142 = arith.constant 0 : index
    %c0_143 = arith.constant 0 : index
    %243 = vector.load %arg12[%c0_142, %c0_143] : memref<4x256xf32, #tpu.memory_space<vmem>>, vector<4x256xf32>
    tpu.vector_store %arg12[%c0_142, %c0_143], %242 {strides = array<i32>} : memref<4x256xf32, #tpu.memory_space<vmem>>, vector<4x256xf32>,
    %c0_144 = arith.constant 0 : index
    %c0_145 = arith.constant 0 : index
    %244 = vector.load %arg12[%c0_144, %c0_145] : memref<4x256xf32, #tpu.memory_space<vmem>>, vector<4x256xf32>
    %c0_146 = arith.constant 0 : index
    %c0_147 = arith.constant 0 : index
    %245 = vector.load %arg9[%c0_146, %c0_147] : memref<4x1xf32, #tpu.memory_space<vmem>>, vector<4x1xf32>
    %cst_148 = arith.constant dense<0.000000e+00> : vector<4xf32>
    %246 = vector.multi_reduction <add>, %244, %cst_148 [1] : vector<4x256xf32> to vector<4xf32>
    %247 = vector.shape_cast %246 : vector<4xf32> to vector<4x1xf32>
    %cst_149 = arith.constant 3.906250e-03 : f32
    %248 = vector.broadcast %cst_149 : f32 to vector<4x1xf32>
    %249 = arith.mulf %247, %248 : vector<4x1xf32>
    %250 = vector.broadcast %249 : vector<4x1xf32> to vector<4x256xf32>
    %251 = arith.subf %244, %250 : vector<4x256xf32>
    %252 = arith.mulf %251, %251 : vector<4x256xf32>
    %cst_150 = arith.constant dense<0.000000e+00> : vector<4xf32>
    %253 = vector.multi_reduction <add>, %252, %cst_150 [1] : vector<4x256xf32> to vector<4xf32>
    %254 = vector.shape_cast %253 : vector<4xf32> to vector<4x1xf32>
    %cst_151 = arith.constant 0.00392156886 : f32
    %255 = vector.broadcast %cst_151 : f32 to vector<4x1xf32>
    %256 = arith.mulf %254, %255 : vector<4x1xf32>
    %cst_152 = arith.constant dense<0.000000e+00> : vector<1xf32>
    %257 = vector.multi_reduction <add>, %247, %cst_152 [0] : vector<4x1xf32> to vector<1xf32>
    %258 = vector.shape_cast %257 : vector<1xf32> to vector<1x1xf32>
    %cst_153 = arith.constant 9.765625E-4 : f32
    %259 = vector.broadcast %cst_153 : f32 to vector<1x1xf32>
    %260 = arith.mulf %258, %259 : vector<1x1xf32>
    %261 = vector.broadcast %260 : vector<1x1xf32> to vector<4x1xf32>
    %262 = arith.subf %249, %261 : vector<4x1xf32>
    %cst_154 = arith.constant dense<0.000000e+00> : vector<1xf32>
    %263 = vector.multi_reduction <add>, %254, %cst_154 [0] : vector<4x1xf32> to vector<1xf32>
    %264 = vector.shape_cast %263 : vector<1xf32> to vector<1x1xf32>
    %265 = arith.mulf %262, %262 : vector<4x1xf32>
    %cst_155 = arith.constant dense<0.000000e+00> : vector<1xf32>
    %266 = vector.multi_reduction <add>, %265, %cst_155 [0] : vector<4x1xf32> to vector<1xf32>
    %267 = vector.shape_cast %266 : vector<1xf32> to vector<1x1xf32>
    %cst_156 = arith.constant 2.560000e+02 : f32
    %268 = vector.broadcast %cst_156 : f32 to vector<1x1xf32>
    %269 = arith.mulf %268, %267 : vector<1x1xf32>
    %270 = arith.addf %264, %269 : vector<1x1xf32>
    %cst_157 = arith.constant 9.77517105E-4 : f32
    %271 = vector.broadcast %cst_157 : f32 to vector<1x1xf32>
    %272 = arith.mulf %270, %271 : vector<1x1xf32>
    %cst_158 = arith.constant 9.99999974E-6 : f32
    %273 = vector.broadcast %cst_158 : f32 to vector<4x1xf32>
    %274 = arith.addf %256, %273 : vector<4x1xf32>
    %275 = math.rsqrt %274 : vector<4x1xf32>
    %cst_159 = arith.constant 9.99999974E-6 : f32
    %276 = vector.broadcast %cst_159 : f32 to vector<1x1xf32>
    %277 = arith.addf %272, %276 : vector<1x1xf32>
    %278 = math.rsqrt %277 : vector<1x1xf32>
    %279 = arith.mulf %245, %275 : vector<4x1xf32>
    %cst_160 = arith.constant 1.000000e+00 : f32
    %280 = vector.broadcast %cst_160 : f32 to vector<4x1xf32>
    %281 = arith.subf %280, %245 : vector<4x1xf32>
    %282 = vector.broadcast %278 : vector<1x1xf32> to vector<4x1xf32>
    %283 = arith.mulf %281, %282 : vector<4x1xf32>
    %284 = arith.addf %279, %283 : vector<4x1xf32>
    %285 = arith.mulf %3, %284 : vector<4x1xf32>
    %286 = arith.mulf %245, %275 : vector<4x1xf32>
    %287 = arith.mulf %286, %249 : vector<4x1xf32>
    %cst_161 = arith.constant 1.000000e+00 : f32
    %288 = vector.broadcast %cst_161 : f32 to vector<4x1xf32>
    %289 = arith.subf %288, %245 : vector<4x1xf32>
    %290 = vector.broadcast %278 : vector<1x1xf32> to vector<4x1xf32>
    %291 = arith.mulf %289, %290 : vector<4x1xf32>
    %292 = vector.broadcast %260 : vector<1x1xf32> to vector<4x1xf32>
    %293 = arith.mulf %291, %292 : vector<4x1xf32>
    %294 = arith.addf %287, %293 : vector<4x1xf32>
    %295 = arith.mulf %3, %294 : vector<4x1xf32>
    %296 = arith.subf %5, %295 : vector<4x1xf32>
    %297 = vector.broadcast %285 : vector<4x1xf32> to vector<4x256xf32>
    %298 = arith.mulf %244, %297 : vector<4x256xf32>
    %299 = vector.broadcast %296 : vector<4x1xf32> to vector<4x256xf32>
    %300 = arith.addf %298, %299 : vector<4x256xf32>
    %301 = arith.addf %300, %1 : vector<4x256xf32>
    %c0_162 = arith.constant 0 : index
    %c0_163 = arith.constant 0 : index
    %c0_164 = arith.constant 0 : index
    %302 = vector.load %arg10[%c0_162, %c0_163, %c0_164] : memref<1x4x256xf32, #tpu.memory_space<vmem>>, vector<1x4x256xf32>
    %303 = vector.shape_cast %302 : vector<1x4x256xf32> to vector<4x256xf32>
    %304 = vector.shape_cast %301 : vector<4x256xf32> to vector<1x4x256xf32>
    tpu.vector_store %arg10[%c0_162, %c0_163, %c0_164], %304 {strides = array<i32>} : memref<1x4x256xf32, #tpu.memory_space<vmem>>, vector<1x4x256xf32>,
    return
  }
  func.func @transform_0(%arg0: i32) -> (i32, i32, i32) {
    %c0_i32 = arith.constant 0 : i32
    %c0_i32_0 = arith.constant 0 : i32
    %c0_i32_1 = arith.constant 0 : i32
    return %arg0, %c0_i32, %c0_i32_0 : i32, i32, i32
  }
  func.func @transform_1(%arg0: i32) -> (i32, i32, i32) {
    %c0_i32 = arith.constant 0 : i32
    %c0_i32_0 = arith.constant 0 : i32
    %c0_i32_1 = arith.constant 0 : i32
    return %arg0, %c0_i32, %c0_i32_0 : i32, i32, i32
  }
  func.func @transform_2(%arg0: i32) -> (i32, i32, i32) {
    %c0_i32 = arith.constant 0 : i32
    %c0_i32_0 = arith.constant 0 : i32
    %c0_i32_1 = arith.constant 0 : i32
    return %arg0, %c0_i32, %c0_i32_0 : i32, i32, i32
  }
  func.func @transform_3(%arg0: i32) -> (i32, i32, i32) {
    %c0_i32 = arith.constant 0 : i32
    %c0_i32_0 = arith.constant 0 : i32
    %c0_i32_1 = arith.constant 0 : i32
    %c0_i32_2 = arith.constant 0 : i32
    return %c0_i32, %c0_i32_0, %c0_i32_1 : i32, i32, i32
  }
  func.func @transform_4(%arg0: i32) -> (i32, i32) {
    %c0_i32 = arith.constant 0 : i32
    %c0_i32_0 = arith.constant 0 : i32
    %c0_i32_1 = arith.constant 0 : i32
    return %c0_i32, %c0_i32_0 : i32, i32
  }
  func.func @transform_5(%arg0: i32) -> (i32, i32) {
    %c0_i32 = arith.constant 0 : i32
    %c0_i32_0 = arith.constant 0 : i32
    %c0_i32_1 = arith.constant 0 : i32
    return %c0_i32, %c0_i32_0 : i32, i32
  }
  func.func @transform_6(%arg0: i32) -> (i32, i32, i32) {
    %c0_i32 = arith.constant 0 : i32
    %c0_i32_0 = arith.constant 0 : i32
    %c0_i32_1 = arith.constant 0 : i32
    %c0_i32_2 = arith.constant 0 : i32
    return %c0_i32, %c0_i32_0, %c0_i32_1 : i32, i32, i32
  }
  func.func @transform_7(%arg0: i32) -> (i32, i32) {
    %c0_i32 = arith.constant 0 : i32
    %c0_i32_0 = arith.constant 0 : i32
    %c0_i32_1 = arith.constant 0 : i32
    return %c0_i32, %c0_i32_0 : i32, i32
  }
  func.func @transform_8(%arg0: i32) -> (i32, i32) {
    %c0_i32 = arith.constant 0 : i32
    %c0_i32_0 = arith.constant 0 : i32
    %c0_i32_1 = arith.constant 0 : i32
    return %c0_i32, %c0_i32_0 : i32, i32
  }
  func.func @transform_9(%arg0: i32) -> (i32, i32, i32) {
    %c0_i32 = arith.constant 0 : i32
    %c0_i32_0 = arith.constant 0 : i32
    %c0_i32_1 = arith.constant 0 : i32
    return %arg0, %c0_i32, %c0_i32_0 : i32, i32, i32
  }
}

</mosaic_0001>

<bundles_post_ra>
// kernel: tpu_custom_call.1
= control target key start
LH: loop header
LB: loop body
LE: loop exit
PB: predicated region body
PF: predicated region fallthrough
CT: control target
= control target key end

     0   :  { %14 = vsyncpa [#allocation5], 0  ;;  %s3341_s0 = inlined_call_operand.vmem [shape: f32[2,4,256], index: 0, kind: input, shape index: {}]   ;;  %s3342_s1 = inlined_call_operand.vmem [shape: f32[2,4,1], index: 1, kind: input, shape index: {}]   ;;  %s3343_s2 = inlined_call_operand.vmem [shape: f32[2,4,1], index: 2, kind: input, shape index: {}]   ;;  %s3344_s3 = inlined_call_operand.vmem [shape: f32[3,4,12], index: 3, kind: input, shape index: {}]   ;;  %s3345_s4 = inlined_call_operand.vmem [shape: f32[4,1], index: 4, kind: input, shape index: {}]   ;;  %s3346_s5 = inlined_call_operand.vmem [shape: f32[4,1], index: 5, kind: input, shape index: {}]   ;;  %s3347_s6 = inlined_call_operand.vmem [shape: f32[3,4,12], index: 6, kind: input, shape index: {}]   ;;  %s3348_s7 = inlined_call_operand.vmem [shape: f32[4,1], index: 7, kind: input, shape index: {}]   ;;  %s3349_s8 = inlined_call_operand.vmem [shape: f32[4,1], index: 8, kind: input, shape index: {}]   ;;  %s3350_s9 = inlined_call_operand.hbm [shape: f32[2,4,256], index: 9, kind: output, shape index: {}]  }
   0x1   :  { %16 = vsyncpa [#allocation5 + $0x1], 0  ;;  %s2805_s30 = smov 0   ;;  %s2807_s10 = smov 0  }
   0x2   :  { %s2809_s11 = smov 0   ;;  %s2811_s12 = smov 0  }
   0x3 LB: > { %s2826_s13 = sadd.s32 4294967295, %s2735_s12   ;;  %s2507_s14 = sadd.s32 4294967294, %s2735_s12   ;;  %s2735_s12 = sphi %s2811_s12, %s3415_s12   ;;  %s2731_s11 = sphi %s2809_s11, %s3414_s11   ;;  %s2727_s10 = sphi %s2807_s10, %s3413_s10   ;;  %s2723_s30 = sphi %s2805_s30, %s3412_s30  }
   0x4   : > { %s2830_s15 = sadd.s32 1, %s2735_s12   ;;  %s233_s16 = sadd.s32 1, %s2731_s11 }
   0x5   : > { %s230_s17 = ssub.s32 %s2735_s12, %s2830_s15  ;;  %p243_p0 = scmp.ne.s32.totalorder %s2731_s11, %s2727_s10 }
   0x6   : > { %p231_p1 = scmp.eq.s32.totalorder %s230_s17, 0  ;;  %p244_p2 = scmp.eq.s32.totalorder %s2826_s13, 1 }
   0x7   : > { %p249_p3 = scmp.ne.s32.totalorder %s2727_s10, %s2723_s30  ;;  %p250_p4 = scmp.eq.s32.totalorder %s2507_s14, 1 }
   0x8   : > { %s2841_s18 = scalar_select %p231_p1, %s2731_s11, %s233_s16  }
   0x9   : > { %p2843_p5 = por %p244_p2, %p243_p0  ;;  %p2847_p6 = por %p250_p4, %p249_p3 }
   0xa   : > { %p2510_p7 = scmp.ge.s32.totalorder %s2735_s12, 1  ;;  %p308_p8 = scmp.lt.s32.totalorder %s2735_s12, 3 }
   0xc   : > { %p309_p9 = pnand %p2510_p7, %p308_p8 }
   0xd   : > { %p352_p10 = scmp.lt.s32.totalorder (!%p309_p9), %s2826_s13, 1  ;;  %s2737_s26 = smov (!%p309_p9), 49   ;;  %v2874_v1 = vld [vmem:[%s3344_s3] sm:$0xf] (!%p309_p9)  ;;  %v2883_v2 = vld [vmem:[%s3344_s3 + $0x4] sm:$0xf] (!%p309_p9)  ;;  %v368_v31 = vlaneseq (!%p309_p9) }
   0xe   : > { %312 = sbr.rel (%p309_p9) target bundleno = 2045 (0x7fd), region = 56  ;;  %s2738_s27 = smov (!%p309_p9), 17   ;;  %v2890_v3 = vld [vmem:[%s3344_s3 + $0x8] sm:$0xf] (!%p309_p9)  ;;  %vm408_vm0 = vcmask (!%p309_p9), 1043592   ;;  %vm409_vm1 = vcmask (!%p309_p9), 1047556  }
   0xf   : > { %s3353_s28 = smov (!%p309_p9), 34   ;;  %s3354_s29 = smov (!%p309_p9), 113   ;;  %vm404_vm2 = vcmask (!%p309_p9), 138240   ;;  %vm412_vm3 = vcmask (!%p309_p9), 134144   ;;  %vm2894_vm4 = vmor (!%p309_p9), %vm409_vm1, %vm408_vm0  ;;  %vm423_vm5 = vcmask (!%p309_p9), 265352   ;;  %vm417_vm6 = vcmask (!%p309_p9), 134152  }
  0x10   : > { %s3351_s17 = smov (!%p309_p9), 124   ;;  %vm425_vm7 = vcmask (!%p309_p9), 3072   ;;  %vm431_vm8 = vcmask (!%p309_p9), 273672   ;;  %s3374_s16 = smov (!%p309_p9), 111   ;;  %v2749_v17 = vmov (!%p309_p9), 0.0   ;;  %v2752_v19 = vmov (!%p309_p9), 0  }
  0x11   : > { %s3372_s23 = smov (!%p309_p9), 127   ;;  %s3370_s24 = smov (!%p309_p9), 95   ;;  %561 = vmatprep.mubr.f32.mxu0 (!%p309_p9), %v2749_v17  ;;  %852 = vmatprep.mubr.f32.mxu1 (!%p309_p9), %v2749_v17  ;;  %v399_v20 = vld [vmem:[%s3345_s4] sm:$0xf] (!%p309_p9)  ;;  %v369_v34 = vand.u32 (!%p309_p9), 127, %v368_v31  ;;  %vm3361_vm9 = vcmask (!%p309_p9), 1039360  }
  0x12   : > { %s3355_s14 = smov (!%p309_p9), 110   ;;  %2661 = vset.pattern.permute.xlu0 (!%p309_p9), %v2752_v19  ;;  %2662 = vset.pattern.permute.xlu1 (!%p309_p9), %v2752_v19  ;;  %vm3360_vm10 = vcmask (!%p309_p9), 908288   ;;  %vm492_vm11 = vcmask (!%p309_p9), 1043456   ;;  %vm489_vm12 = vcmask (!%p309_p9), 31744   ;;  %vm3359_vm13 = vcmask (!%p309_p9), 1031168  }
  0x13   : > { %v370_v37 = vadd.s32 (!%p309_p9), 128, %v369_v34  ;;  %v375_v40 = vand.u32 (!%p309_p9), 15, %v369_v34  ;;  %v441_v34 = vshrl.u32 (!%p309_p9), %v368_v31, 7 }
  0x15   : > { %s2855_s21 = scalar_select %p352_p10, %s2826_s13, 1  ;;  %v382_v41 = vand.u32 15, %v370_v37  ;;  %vm2977_vm14 = vcmp.eq.s32.totalorder %v375_v40, 0  ;;  %vm3006_vm1 = vcmp.eq.s32.totalorder %v375_v40, 15 }
  0x17   : > { %s2579_s22 = sshll.u32 %s2855_s21, 3  ;;  %vm2981_vm15 = vcmp.eq.s32.totalorder %v382_v41, 0  ;;  %vm2989_vm0 = vcmp.eq.s32.totalorder %v382_v41, 15 }
  0x18   : > { %s356_s25 = scalar_lea.vmem %s3341_s0, %s2579_s22  ;;  %s3376_s22 = smov 120  }
  0x19   : > { %v2861_v0 = vld [vmem:[%s356_s25] sm:$0xff]  ;;  %s3368_s25 = smov 126  }
  0x1a   : > { %419 = vrot.lane.b32.xlu1 %v2861_v0, %s2737_s26  ;;  %401 = vrot.lane.b32.xlu0 %v2861_v0, %s2738_s27 }
  0x1e   : > { %427 = vrot.lane.b32.xlu1 %v2861_v0, %s3353_s28  ;;  %414 = vrot.lane.b32.xlu0 %v2861_v0, %s3354_s29  ;;  %s3366_s28 = smov 94   ;;  %s3364_s29 = smov 96  }
  0x22   : > { %478 = vrot.lane.b32.xlu1 %v2874_v1, %s3351_s17 }
  0x26   : > { %647 = vrot.lane.b32.xlu1 %v2874_v1, %s3376_s22 }
  0x2a   : > { %771 = vrot.lane.b32.xlu1 %v2883_v2, %s3351_s17 }
  0x2e   : > { %1062 = vrot.lane.b32.xlu1 %v2890_v3, %s3351_s17  ;;  %s3357_s17 = smov 112  }
  0x8c   : > { %v420_v4 = vpop.permute.xlu1 %419  ;;  %v402_v5 = vpop.permute.xlu0 %401 }
  0x8d   : > { %v421_v6 = vrot.slane %v420_v4, 4  ;;  %v403_v8 = vrot.slane %v402_v5, 4 }
  0x8f   : > { %v405_v9 = vsel %vm404_vm2, %v403_v8, %v402_v5  ;;  %413 = vst.msk [vmem:[#allocation2 + $0x8] sm:$0xf] %vm412_vm3, %v403_v8 }
  0x90   : > { %411 = vst.msk [vmem:[#allocation2] sm:$0xff] %vm2894_vm4, %v405_v9  ;;  %v428_v10 = vpop.permute.xlu1 %427  ;;  %v415_v11 = vpop.permute.xlu0 %414 }
  0x91   : > { %424 = vst.msk [vmem:[#allocation2 + $0x8] sm:$0xf] %vm423_vm5, %v421_v6  ;;  %v429_v12 = vrot.slane %v428_v10, 4 }
  0x92   : > { %418 = vst.msk [vmem:[#allocation2] sm:$0xf] %vm417_vm6, %v415_v11 }
  0x93   : > { %426 = vst.msk [vmem:[#allocation2] sm:$0xf] %vm425_vm7, %v2861_v0 }
  0x94   : > { %432 = vst.msk [vmem:[#allocation2 + $0x8] sm:$0xf] %vm431_vm8, %v429_v12  ;;  %v479_v21 = vpop.permute.xlu1 %478 }
  0x98   : > { %v2962_v22 = vpop.permute.xlu1 %647 }
  0x9a   : > { %v2911_v16 = vld [vmem:[#allocation2] sm:$0xff] }
  0x9b   : > { %v737_v13 = vld [vmem:[#allocation2 + $0x8] sm:$0xf]  ;;  %v2930_v18 = vcombine.high %v2911_v16, %v2911_v16 }
  0x9c   : > { %v447_v14 = vld [vmem:[#allocation2 + $0x8] sm:$0xf]  ;;  %777 = vrot.lane.b32.xlu0 %v737_v13, %s3374_s16  ;;  %v772_v23 = vpop.permute.xlu1 %771 }
  0x9d   : > { %484 = vrot.lane.b32.xlu1 %v447_v14, %s3372_s23  ;;  %v1028_v15 = vld [vmem:[#allocation2 + $0x8] sm:$0xf] }
  0xa0   : > { %1068 = vrot.lane.b32.xlu0 %v1028_v15, %s3370_s24  ;;  %v2964_v24 = vpop.permute.xlu1 %1062 }
  0xa1   : > { %459 = vrot.lane.b32.xlu1 %v447_v14, %s3368_s25 }
  0xa4   : > { %480 = vrot.lane.b32.xlu0 %v2911_v16, %s3372_s23 }
  0xa5   : > { %745 = vrot.lane.b32.xlu1 %v737_v13, %s3355_s14 }
  0xa8   : > { %455 = vrot.lane.b32.xlu0 %v2911_v16, %s3368_s25 }
  0xa9   : > { %756 = vrot.lane.b32.xlu1 %v737_v13, %s3357_s17 }
  0xac   : > { %773 = vrot.lane.b32.xlu0 %v2911_v16, %s3374_s16 }
  0xad   : > { %752 = vrot.lane.b32.xlu1 %v2911_v16, %s3357_s17 }
  0xb0   : > { %1064 = vrot.lane.b32.xlu0 %v2911_v16, %s3370_s24 }
  0xb1   : > { %1036 = vrot.lane.b32.xlu1 %v1028_v15, %s3366_s28 }
  0xb4   : > { %482 = vrot.lane.b32.xlu0 %v2930_v18, %s3372_s23  ;;  %s3393_s23 = smov 120  }
  0xb5   : > { %775 = vrot.lane.b32.xlu1 %v2930_v18, %s3374_s16  ;;  %s3392_s16 = smov 124  }
  0xb8   : > { %457 = vrot.lane.b32.xlu0 %v2930_v18, %s3368_s25 }
  0xb9   : > { %1066 = vrot.lane.b32.xlu1 %v2930_v18, %s3370_s24 }
  0xbc   : > { %741 = vrot.lane.b32.xlu0 %v2911_v16, %s3355_s14 }
  0xbd   : > { %1047 = vrot.lane.b32.xlu1 %v1028_v15, %s3364_s29 }
  0xc0   : > { %743 = vrot.lane.b32.xlu0 %v2930_v18, %s3355_s14  ;;  %s3395_s14 = smov 127  }
  0xc1   : > { %1043 = vrot.lane.b32.xlu1 %v2911_v16, %s3364_s29 }
  0xc4   : > { %754 = vrot.lane.b32.xlu0 %v2930_v18, %s3357_s17  ;;  %s2514_s17 = sshll.u32 %s2855_s21, 2  ;;  %s3390_s21 = smov 113  }
  0xc5   : > { %1229 = vrot.lane.b32.xlu1 %v2890_v3, %s3376_s22  ;;  %s360_s24 = scalar_lea.vmem %s3342_s1, %s2514_s17 }
  0xc8   : > { %1034 = vrot.lane.b32.xlu0 %v2930_v18, %s3366_s28 }
  0xcc   : > { %1045 = vrot.lane.b32.xlu0 %v2930_v18, %s3364_s29  ;;  %s3398_s29 = smov 110  }
  0xd0   : > { %1032 = vrot.lane.b32.xlu0 %v2911_v16, %s3366_s28  ;;  %s3391_s28 = smov 34  }
  0xd4   : > { %938 = vrot.lane.b32.xlu0 %v2883_v2, %s3376_s22  ;;  %s364_s22 = scalar_lea.vmem %s3343_s2, %s2514_s17  ;;  %s3394_s17 = smov 111  }
  0xd8   : > { %435 = vperm.xlu0 %2661, %v399_v20  }
 0x10e   : > { %v778_v26 = vpop.permute.xlu0 %777 }
 0x10f   : > { %v485_v25 = vpop.permute.xlu1 %484 }
 0x112   : > { %v1069_v28 = vpop.permute.xlu0 %1068 }
 0x113   : > { %v460_v27 = vpop.permute.xlu1 %459 }
 0x116   : > { %v481_v30 = vpop.permute.xlu0 %480 }
 0x117   : > { %v746_v29 = vpop.permute.xlu1 %745 }
 0x11a   : > { %v456_v33 = vpop.permute.xlu0 %455 }
 0x11b   : > { %v757_v32 = vpop.permute.xlu1 %756 }
 0x11e   : > { %v774_v36 = vpop.permute.xlu0 %773 }
 0x11f   : > { %v753_v35 = vpop.permute.xlu1 %752 }
 0x122   : > { %v1065_v39 = vpop.permute.xlu0 %1064 }
 0x123   : > { %v2967_v38 = vpop.permute.xlu1 %1036 }
 0x126   : > { %v483_v43 = vpop.permute.xlu0 %482 }
 0x127   : > { %v776_v42 = vpop.permute.xlu1 %775  ;;  %v488_v44 = vsel %vm3361_vm9, %v483_v43, %v485_v25  ;;  %v487_v46 = vsel %vm3361_vm9, %v481_v30, %v483_v43  ;;  %vm3362_vm9 = vcmask 916480  }
 0x128   : > { %v781_v45 = vsel %vm3360_vm10, %v776_v42, %v778_v26  ;;  %v780_v47 = vsel %vm3360_vm10, %v774_v36, %v776_v42  ;;  %2516 = vmatprep.subr.msk.mxu0 %vm492_vm11, %v488_v44  ;;  %vm3363_vm10 = vcmask 900096  }
 0x129   : > { %2526 = vmatprep.subr.msk.mxu1 %vm492_vm11, %v781_v45  ;;  %2517 = vmatpush1.msk.msra.mxu0 %vm492_vm11, %v487_v46 }
 0x12a   : > { %2527 = vmatpush1.msk.msra.mxu1 %vm492_vm11, %v780_v47  ;;  %2518 = vmatmul.mubr.msk.f32.vlgmr.msra.gmra.mrb[0].mxu0 %vm489_vm12, %v479_v21  ;;  %v458_v50 = vpop.permute.xlu0 %457 }
 0x12b   : > { %2528 = vmatmul.mubr.msk.f32.vlgmr.msra.gmra.mrb[0].mxu1 %vm489_vm12, %v772_v23  ;;  %v462_v51 = vsel %vm3359_vm13, %v456_v33, %v458_v50  ;;  %v463_v52 = vsel %vm3359_vm13, %v458_v50, %v460_v27  ;;  %640 = vmatprep.mubr.f32.mxu0 %v2749_v17  ;;  %vm1070_vm13 = vcmask 777216   ;;  %v1067_v59 = vpop.permute.xlu1 %1066 }
 0x12c   : > { %v467_v54 = vsel %vm2977_vm14, %v462_v51, %v2911_v16  ;;  %v468_v55 = vsel %vm2981_vm15, %v463_v52, %v2930_v18  ;;  %931 = vmatprep.mubr.f32.mxu1 %v2749_v17  ;;  %v474_v57 = vsel %vm2989_vm0, %v2930_v18, %v463_v52  ;;  %v473_v60 = vsel %vm3006_vm1, %v2911_v16, %v462_v51 }
 0x12d   : > { %2519 = vmatprep.subr.msk.mxu0 %vm492_vm11, %v468_v55  ;;  %v1072_v62 = vsel %vm1070_vm13, %v1067_v59, %v1069_v28  ;;  %v1071_v10 = vsel %vm1070_vm13, %v1065_v39, %v1067_v59  ;;  %v2753_v28 = vmov 839922192  }
 0x12e   : > { %2520 = vmatpush1.msk.msra.mxu0 %vm492_vm11, %v467_v54  ;;  %v742_v56 = vpop.permute.xlu0 %741 }
 0x12f   : > { %2522 = vmatprep.subr.msk.mxu0 %vm492_vm11, %v474_v57  ;;  %v1048_v13 = vpop.permute.xlu1 %1047 }
 0x132   : > { %2521 = vmatmul.mubr.msk.f32.vlgmr.msra.gmra.mrb[0].mxu0 %vm489_vm12, %v2874_v1  ;;  %v744_v61 = vpop.permute.xlu0 %743 }
 0x133   : > { %2523 = vmatpush1.msk.msra.mxu0 %vm492_vm11, %v473_v60  ;;  %721 = vmatprep.mubr.f32.mxu0 %v2749_v17  ;;  %v748_v4 = vsel %vm3363_vm10, %v742_v56, %v744_v61  ;;  %v749_v5 = vsel %vm3363_vm10, %v744_v61, %v746_v29  ;;  %vm1049_vm10 = vcmask 785408   ;;  %v1044_v19 = vpop.permute.xlu1 %1043  ;;  %v438_v29 = vunpack.c.l.s4 %v2753_v28 }
 0x134   : > { %2536 = vmatprep.subr.msk.mxu0 %vm492_vm11, %v1072_v62 }
 0x135   : > { %v439_v33 = vunpack.c.0.s8 %v438_v29 }
 0x136   : > { %v755_v63 = vpop.permute.xlu0 %754 }
 0x137   : > { %v759_v6 = vsel %vm3362_vm9, %v753_v35, %v755_v63  ;;  %v760_v1 = vsel %vm3362_vm9, %v755_v63, %v757_v32  ;;  %vm1038_vm9 = vcmask 769024   ;;  %v1230_v27 = vpop.permute.xlu1 %1229  ;;  %v3072_v35 = vsub.s32 %v439_v33, %v441_v34 }
 0x138   : > { %v763_v8 = vsel %vm2977_vm14, %v748_v4, %v759_v6  ;;  %v764_v9 = vsel %vm2981_vm15, %v749_v5, %v760_v1  ;;  %v766_v12 = vsel %vm2989_vm0, %v760_v1, %v749_v5  ;;  %v765_v14 = vsel %vm3006_vm1, %v759_v6, %v748_v4 }
 0x139   : > { %2529 = vmatprep.subr.msk.mxu1 %vm492_vm11, %v764_v9 }
 0x13a   : > { %2524 = vmatmul.mubr.msk.f32.vlgmr.msra.gmra.mrb[0].mxu0 %vm489_vm12, %v2962_v22  ;;  %2530 = vmatpush1.msk.msra.mxu1 %vm492_vm11, %v763_v8  ;;  %v1035_v11 = vpop.permute.xlu0 %1034 }
 0x13b   : > { %2537 = vmatpush1.msk.msra.mxu0 %vm492_vm11, %v1071_v10  ;;  %2532 = vmatprep.subr.msk.mxu1 %vm492_vm11, %v766_v12  ;;  %v1040_v16 = vsel %vm1038_vm9, %v1035_v11, %v2967_v38 }
 0x13c   : > { %2531 = vmatmul.mubr.msk.f32.vlgmr.msra.gmra.mrb[0].mxu1 %vm489_vm12, %v2883_v2  ;;  %1143 = vmatprep.mubr.f32.mxu0 %v2749_v17 }
 0x13d   : > { %2533 = vmatpush1.msk.msra.mxu1 %vm492_vm11, %v765_v14  ;;  %1012 = vmatprep.mubr.f32.mxu1 %v2749_v17 }
 0x13e   : > { %2538 = vmatmul.mubr.msk.f32.vlgmr.msra.gmra.mrb[2].mxu0 %vm489_vm12, %v2964_v24  ;;  %v1046_v15 = vpop.permute.xlu0 %1045 }
 0x13f   : > { %v1051_v18 = vsel %vm1049_vm10, %v1046_v15, %v1048_v13  ;;  %1222 = vmatprep.mubr.f32.mxu0 %v2749_v17  ;;  %v1050_v21 = vsel %vm1049_vm10, %v1044_v19, %v1046_v15 }
 0x140   : > { %v1055_v2 = vsel %vm2981_vm15, %v1040_v16, %v1051_v18  ;;  %v1057_v24 = vsel %vm2989_vm0, %v1051_v18, %v1040_v16 }
 0x141   : > { %2539 = vmatprep.subr.msk.mxu0 %vm492_vm11, %v1055_v2 }
 0x142   : > { %v1033_v20 = vpop.permute.xlu0 %1032 }
 0x143   : > { %v1039_v22 = vsel %vm1038_vm9, %v1033_v20, %v1035_v11 }
 0x144   : > { %v1054_v23 = vsel %vm2977_vm14, %v1039_v22, %v1050_v21  ;;  %v1056_v25 = vsel %vm3006_vm1, %v1050_v21, %v1039_v22 }
 0x145   : > { %2540 = vmatpush1.msk.msra.mxu0 %vm492_vm11, %v1054_v23 }
 0x146   : > { %2541 = vmatmul.mubr.msk.f32.vlgmr.msra.gmra.mrb[2].mxu0 %vm489_vm12, %v2890_v3  ;;  %2542 = vmatprep.subr.msk.mxu0 %vm492_vm11, %v1057_v24  ;;  %v939_v26 = vpop.permute.xlu0 %938 }
 0x147   : > { %2534 = vmatmul.mubr.msk.f32.vlgmr.msra.gmra.mrb[0].mxu1 %vm489_vm12, %v939_v26  ;;  %2543 = vmatpush1.msk.msra.mxu0 %vm492_vm11, %v1056_v25 }
 0x148   : > { %1303 = vmatprep.mubr.f32.mxu0 %v2749_v17  ;;  %1558 = vmatprep.mubr.f32.mxu1 %v2749_v17 }
 0x14e   : > { %2544 = vmatmul.mubr.msk.f32.vlgmr.msra.gmra.mrb[2].mxu0 %vm489_vm12, %v1230_v27 }
 0x14f   : > { %1846 = vmatprep.mubr.f32.mxu0 %v2749_v17 }
 0x157   : > { %v436_v36 = vpop.permute.xlu0 %435 }
 0x158   : > { %v443_v37 = vrot.slane %v436_v36, %v3072_v35  ;;  %v1319_v36 = vld [vmem:[%s3346_s5] sm:$0xf] }
 0x20d   : > { %v723_v30 = vpop.f32.mrb[0].mxu0 }
 0x20e   : > { %v725_v3 = vpop.f32.mrb[1].mxu0 }
 0x20f   : > { %v732_v32 = vcombine.low %v723_v30, %v725_v3 }
 0x211   : > { %v734_v40 = vadd.f32 %v732_v32, %v443_v37  ;;  %v1381_v37 = vsub.f32 1.0, %v1319_v36 }
 0x21a   : > { %v1014_v38 = vpop.f32.mrb[0].mxu1 }
 0x21b   : > { %v1016_v39 = vpop.f32.mrb[1].mxu1 }
 0x21c   : > { %v1023_v41 = vcombine.low %v1014_v38, %v1016_v39 }
 0x21e   : > { %v1025_v42 = vadd.f32 %v1023_v41, %v734_v40  ;;  %v3096_v41 = vld [vmem:[%s360_s24] sm:$0xf]  ;;  %s3401_s24 = smov 96  }
 0x221   : > { %v1305_v43 = vpop.f32.mrb[2].mxu0 }
 0x222   : > { %v1307_v44 = vpop.f32.mrb[3].mxu0 }
 0x223   : > { %v1314_v45 = vcombine.low %v1305_v43, %v1307_v44 }
 0x225   : > { %v3075_v46 = vadd.f32 %v1314_v45, %v1025_v42 }
 0x227   : > { %v1321_v47 = vcombine.high %v3075_v46, %v3075_v46  ;;  %v1323_v31 = vsel %vm492_vm11, %v3075_v46, 0.0 }
 0x229   : > { %v1324_v50 = vsel %vm492_vm11, %v1321_v47, 0.0 }
 0x22a   : > { %v1325_v51 = vadd.f32 %v1324_v50, %v1323_v31  ;;  %v3102_v31 = vld [vmem:[%s364_s22] sm:$0xf]  ;;  %s3399_s22 = smov 112  }
 0x22c   : > { %1326 = vadd.xlane.f32.xlu1 %v1325_v51 }
 0x2b9   : > { %v1327_v52 = vpop.xlane.xlu1 %1326 }
 0x2ba   : > { %v1328_v54 = vmul.f32 0.00390625, %v1327_v52  ;;  %v1349_v63 = vsel %vm492_vm11, %v1327_v52, 0.0 }
 0x2bb   : > { %v1350_v4 = vrot.slane %v1349_v63, 4 }
 0x2bc   : > { %v1336_v55 = vrot.slane %v1328_v54, %v3072_v35 }
 0x2bd   : > { %v1351_v5 = vadd.f32 %v1350_v4, %v1349_v63 }
 0x2be   : > { %v1338_v56 = vsub.f32 %v3075_v46, %v1336_v55 }
 0x2bf   : > { %v1352_v6 = vrot.slane %v1351_v5, 2 }
 0x2c0   : > { %v1339_v57 = vmul.f32 %v1338_v56, %v1338_v56 }
 0x2c1   : > { %v1353_v1 = vadd.f32 %v1352_v6, %v1351_v5 }
 0x2c2   : > { %v1341_v59 = vcombine.high %v1339_v57, %v1339_v57  ;;  %v1343_v60 = vsel %vm492_vm11, %v1339_v57, 0.0 }
 0x2c3   : > { %v1354_v8 = vrot.slane %v1353_v1, 1 }
 0x2c4   : > { %v1344_v61 = vsel %vm492_vm11, %v1341_v59, 0.0 }
 0x2c5   : > { %v1345_v62 = vadd.f32 %v1344_v61, %v1343_v60  ;;  %v1355_v9 = vadd.f32 %v1354_v8, %v1353_v1  ;;  %v3116_v61 = vld [vmem:[%s3347_s6] sm:$0xf] }
 0x2c7   : > { %1346 = vadd.xlane.f32.xlu0 %v1345_v62  ;;  %v1356_v10 = vmul.f32 0.0009765625, %v1355_v9  ;;  %v3132_v62 = vld [vmem:[%s3347_s6 + $0x8] sm:$0xf] }
 0x2c9   : > { %v1357_v11 = vsub.f32 %v1328_v54, %v1356_v10 }
 0x2cb   : > { %v1365_v12 = vmul.f32 %v1357_v11, %v1357_v11 }
 0x2cd   : > { %v1366_v13 = vsel %vm492_vm11, %v1365_v12, 0.0 }
 0x2ce   : > { %v1367_v14 = vrot.slane %v1366_v13, 4 }
 0x2d0   : > { %v1368_v15 = vadd.f32 %v1367_v14, %v1366_v13 }
 0x2d2   : > { %v1369_v16 = vrot.slane %v1368_v15, 2 }
 0x2d4   : > { %v1370_v18 = vadd.f32 %v1369_v16, %v1368_v15  ;;  %v1417_v15 = vld [vmem:[%s3348_s7] sm:$0xf] }
 0x2d6   : > { %v1371_v22 = vrot.slane %v1370_v18, 1 }
 0x2d8   : > { %v1372_v26 = vadd.f32 %v1371_v22, %v1370_v18 }
 0x2da   : > { %v1373_v29 = vmul.f32 256.0, %v1372_v26 }
 0x354   : > { %v1347_v2 = vpop.xlane.xlu0 %1346 }
 0x355   : > { %v1358_v19 = vsel %vm492_vm11, %v1347_v2, 0.0  ;;  %v1348_v24 = vmul.f32 0.003921569, %v1347_v2 }
 0x356   : > { %v1359_v20 = vrot.slane %v1358_v19, 4 }
 0x357   : > { %v1376_v30 = vadd.f32 1e-05, %v1348_v24 }
 0x358   : > { %v1360_v21 = vadd.f32 %v1359_v20, %v1358_v19 }
 0x359   : > { %2665 = vrsqrt.f32 %v1376_v30 }
 0x35a   : > { %v1361_v23 = vrot.slane %v1360_v21, 2 }
 0x35c   : > { %v1362_v25 = vadd.f32 %v1361_v23, %v1360_v21 }
 0x35e   : > { %v1363_v27 = vrot.slane %v1362_v25, 1 }
 0x360   : > { %v1364_v28 = vadd.f32 %v1363_v27, %v1362_v25 }
 0x362   : > { %v1374_v3 = vadd.f32 %v1373_v29, %v1364_v28 }
 0x363   : > { %v2666_v34 = vpop.eup %2665 }
 0x364   : > { %v1375_v32 = vmul.f32 0.0009775171, %v1374_v3  ;;  %v1380_v38 = vmul.f32 %v2666_v34, %v1319_v36 }
 0x366   : > { %v1378_v33 = vadd.f32 1e-05, %v1375_v32  ;;  %v1385_v43 = vmul.f32 %v1380_v38, %v1328_v54 }
 0x368   : > { %2667 = vrsqrt.f32 %v1378_v33 }
 0x372   : > { %v2668_v39 = vpop.eup %2667 }
 0x373   : > { %v1382_v40 = vmul.f32 %v2668_v39, %v1381_v37 }
 0x375   : > { %v1383_v42 = vadd.f32 %v1382_v40, %v1380_v38  ;;  %v1386_v44 = vmul.f32 %v1382_v40, %v1356_v10 }
 0x377   : > { %v1384_v45 = vmul.f32 %v1383_v42, %v3096_v41  ;;  %v1387_v47 = vadd.f32 %v1386_v44, %v1385_v43 }
 0x379   : > { %1392 = vperm.xlu1 %2662, %v1384_v45   ;;  %v1388_v50 = vmul.f32 %v1387_v47, %v3096_v41 }
 0x37b   : > { %v1389_v51 = vsub.f32 %v3102_v31, %v1388_v50 }
 0x37d   : > { %1405 = vperm.xlu0 %2661, %v1389_v51  }
 0x3f8   : > { %v1393_v52 = vpop.permute.xlu1 %1392 }
 0x3f9   : > { %v1400_v55 = vrot.slane %v1393_v52, %v3072_v35 }
 0x3fb   : > { %v1402_v57 = vmul.f32 %v1400_v55, %v3075_v46  ;;  %v3125_v46 = vld [vmem:[%s3347_s6 + $0x4] sm:$0xf] }
 0x3fc   : > { %v1406_v56 = vpop.permute.xlu0 %1405 }
 0x3fd   : > { %v1413_v54 = vrot.slane %v1406_v56, %v3072_v35 }
 0x3ff   : > { %v1415_v59 = vadd.f32 %v1413_v54, %v1402_v57 }
 0x401   : > { %v1416_v60 = vmax.f32 %v1415_v59, 0.0 }
 0x403   : > { %1431 = vrot.lane.b32.xlu0 %v1416_v60, %s2737_s26  ;;  %1419 = vrot.lane.b32.xlu1 %v1416_v60, %s2738_s27 }
 0x407   : > { %1427 = vrot.lane.b32.xlu1 %v1416_v60, %s3390_s21  ;;  %s3396_s21 = smov 95  }
 0x40b   : > { %1437 = vrot.lane.b32.xlu1 %v1416_v60, %s3391_s28  ;;  %s3397_s28 = smov 126  }
 0x40f   : > { %1478 = vrot.lane.b32.xlu1 %v3116_v61, %s3392_s16 }
 0x413   : > { %1644 = vrot.lane.b32.xlu1 %v3116_v61, %s3393_s23 }
 0x417   : > { %1766 = vrot.lane.b32.xlu1 %v3125_v46, %s3392_s16 }
 0x41b   : > { %2054 = vrot.lane.b32.xlu1 %v3132_v62, %s3392_s16  ;;  %s3400_s16 = smov 94  }
 0x475   : > { %v1432_v63 = vpop.permute.xlu0 %1431  ;;  %v1420_v4 = vpop.permute.xlu1 %1419 }
 0x476   : > { %v1433_v5 = vrot.slane %v1432_v63, 4  ;;  %v1421_v6 = vrot.slane %v1420_v4, 4 }
 0x478   : > { %v1422_v1 = vsel %vm404_vm2, %v1421_v6, %v1420_v4  ;;  %1426 = vst.msk [vmem:[#allocation2 + $0x8] sm:$0xf] %vm412_vm3, %v1421_v6  ;;  %vm3402_vm2 = vcmask 1039360  }
 0x479   : > { %1425 = vst.msk [vmem:[#allocation2] sm:$0xff] %vm2894_vm4, %v1422_v1  ;;  %v1428_v8 = vpop.permute.xlu1 %1427  ;;  %vm3403_vm3 = vmmov %vm3402_vm2  ;;  %vm3404_vm4 = vcmask 908288  }
 0x47a   : > { %1435 = vst.msk [vmem:[#allocation2 + $0x8] sm:$0xf] %vm423_vm5, %v1433_v5  ;;  %vm3405_vm5 = vmmov %vm3404_vm4 }
 0x47b   : > { %1430 = vst.msk [vmem:[#allocation2] sm:$0xf] %vm417_vm6, %v1428_v8  ;;  %vm3406_vm6 = vcmask 1031168  }
 0x47c   : > { %1436 = vst.msk [vmem:[#allocation2] sm:$0xf] %vm425_vm7, %v1416_v60  ;;  %vm3407_vm7 = vmmov %vm3406_vm6 }
 0x47d   : > { %v1438_v9 = vpop.permute.xlu1 %1437 }
 0x47e   : > { %v1439_v10 = vrot.slane %v1438_v9, 4 }
 0x480   : > { %1441 = vst.msk [vmem:[#allocation2 + $0x8] sm:$0xf] %vm431_vm8, %v1439_v10  ;;  %vm3408_vm8 = vcmask 900096  }
 0x481   : > { %v1479_v16 = vpop.permute.xlu1 %1478 }
 0x483   : > { %v3148_v7 = vld [vmem:[#allocation2] sm:$0xff] }
 0x484   : > { %v1459_v14 = vcombine.high %v3148_v7, %v3148_v7 }
 0x485   : > { %v1645_v18 = vpop.permute.xlu1 %1644 }
 0x487   : > { %v1734_v11 = vld [vmem:[#allocation2 + $0x8] sm:$0xf] }
 0x488   : > { %v1456_v12 = vld [vmem:[#allocation2 + $0x8] sm:$0xf]  ;;  %1772 = vrot.lane.b32.xlu0 %v1734_v11, %s3394_s17 }
 0x489   : > { %1484 = vrot.lane.b32.xlu1 %v1456_v12, %s3395_s14  ;;  %v2022_v13 = vld [vmem:[#allocation2 + $0x8] sm:$0xf]  ;;  %v1767_v2 = vpop.permute.xlu1 %1766 }
 0x48c   : > { %2060 = vrot.lane.b32.xlu0 %v2022_v13, %s3396_s21 }
 0x48d   : > { %1464 = vrot.lane.b32.xlu1 %v1456_v12, %s3397_s28  ;;  %v3187_v19 = vpop.permute.xlu1 %2054 }
 0x490   : > { %1480 = vrot.lane.b32.xlu0 %v3148_v7, %s3395_s14 }
 0x491   : > { %1742 = vrot.lane.b32.xlu1 %v1734_v11, %s3398_s29 }
 0x494   : > { %1460 = vrot.lane.b32.xlu0 %v3148_v7, %s3397_s28 }
 0x495   : > { %1752 = vrot.lane.b32.xlu1 %v1734_v11, %s3399_s22 }
 0x498   : > { %1768 = vrot.lane.b32.xlu0 %v3148_v7, %s3394_s17 }
 0x499   : > { %1748 = vrot.lane.b32.xlu1 %v3148_v7, %s3399_s22 }
 0x49c   : > { %2056 = vrot.lane.b32.xlu0 %v3148_v7, %s3396_s21 }
 0x49d   : > { %2030 = vrot.lane.b32.xlu1 %v2022_v13, %s3400_s16 }
 0x4a0   : > { %1482 = vrot.lane.b32.xlu0 %v1459_v14, %s3395_s14 }
 0x4a1   : > { %1770 = vrot.lane.b32.xlu1 %v1459_v14, %s3394_s17  ;;  %s349_s17 = sand.u32 1, %s2727_s10  }
 0x4a2   : > { %s2511_s14 = sshll.u32 %s349_s17, 3  ;;  %s2410_s25 = scalar_lea.sflag [#allocation5], %s349_s17 }
 0x4a4   : > { %1462 = vrot.lane.b32.xlu0 %v1459_v14, %s3397_s28  ;;  %s351_s28 = scalar_lea.vmem [#allocation4], %s2511_s14 }
 0x4a5   : > { %2058 = vrot.lane.b32.xlu1 %v1459_v14, %s3396_s21  ;;  %s2580_s21 = sshll.u32 %s2826_s13, 7  ;;  %s2754_s13 = smov [#allocation4]  }
 0x4a8   : > { %1738 = vrot.lane.b32.xlu0 %v3148_v7, %s3398_s29 }
 0x4a9   : > { %2040 = vrot.lane.b32.xlu1 %v2022_v13, %s3401_s24 }
 0x4ac   : > { %1740 = vrot.lane.b32.xlu0 %v1459_v14, %s3398_s29  ;;  %s2424_s29 = sshll.u32 %s351_s28, 4  ;;  %s3301_s29 = int_to_ptr.vmem [resolvable:$true] %s2424_s29 }
 0x4ad   : > { %2036 = vrot.lane.b32.xlu1 %v3148_v7, %s3401_s24  ;;  %s2673_s26 = scalar_lea.vmem %s3301_s29, 128 }
 0x4ae   : > { %p2674_p11 = scmp.ne.s32.totalorder %s3301_s29, %s2673_s26 }
 0x4b0   : > { %1750 = vrot.lane.b32.xlu0 %v1459_v14, %s3399_s22  ;;  %p2675_p12 = pnand %p2674_p11, %p2843_p5 }
 0x4b1   : > { %2220 = vrot.lane.b32.xlu1 %v3132_v62, %s3393_s23 }
 0x4b2   : > { %p2676_p13 = pneg %p2675_p12 }
 0x4b4   : > { %2028 = vrot.lane.b32.xlu0 %v1459_v14, %s3400_s16 }
 0x4b8   : > { %2038 = vrot.lane.b32.xlu0 %v1459_v14, %s3401_s24  ;;  %s3299_s24 = scalar_lea.hbm %s3350_s9, %s2580_s21 }
 0x4bc   : > { %2026 = vrot.lane.b32.xlu0 %v3148_v7, %s3400_s16 }
 0x4c0   : > { %1932 = vrot.lane.b32.xlu0 %v3125_v46, %s3393_s23  ;;  %s2677_s23 = sshll.u32 %s2754_s13, 4  ;;  %s2678_s23 = int_to_ptr.vmem [resolvable:$false] %s2677_s23 }
 0x4c1   : > { %s2679_s27 = scalar_lea.vmem %s2678_s23, 256  ;;  %p2680_p0 = scmp.lt.s32.totalorder %s3301_s29, %s2678_s23 }
 0x4c2   : > { %p2681_p1 = scmp.lt.s32.totalorder %s2679_s27, %s2673_s26 }
 0x4c4   : > { %1444 = vperm.xlu0 %2661, %v1417_v15   ;;  %p2682_p2 = por %p2681_p1, %p2680_p0 }
 0x4c6   : > { %p2683_p3 = pnand %p2682_p2, %p2676_p13 }
 0x4fa   : > { %v1773_v20 = vpop.permute.xlu0 %1772 }
 0x4fb   : > { %v1485_v21 = vpop.permute.xlu1 %1484 }
 0x4fe   : > { %v2061_v22 = vpop.permute.xlu0 %2060 }
 0x4ff   : > { %v1465_v23 = vpop.permute.xlu1 %1464 }
 0x502   : > { %v1481_v24 = vpop.permute.xlu0 %1480 }
 0x503   : > { %v1743_v25 = vpop.permute.xlu1 %1742 }
 0x506   : > { %v1461_v26 = vpop.permute.xlu0 %1460 }
 0x507   : > { %v1753_v27 = vpop.permute.xlu1 %1752 }
 0x50a   : > { %v1769_v28 = vpop.permute.xlu0 %1768 }
 0x50b   : > { %v1749_v29 = vpop.permute.xlu1 %1748 }
 0x50e   : > { %v2057_v30 = vpop.permute.xlu0 %2056 }
 0x50f   : > { %v2031_v3 = vpop.permute.xlu1 %2030 }
 0x512   : > { %v1483_v32 = vpop.permute.xlu0 %1482 }
 0x513   : > { %v1771_v33 = vpop.permute.xlu1 %1770  ;;  %v1486_v34 = vsel %vm3402_vm2, %v1481_v24, %v1483_v32  ;;  %v1487_v36 = vsel %vm3403_vm3, %v1483_v32, %v1485_v21  ;;  %vm3409_vm2 = vmmov %vm3408_vm8  ;;  %vm3410_vm3 = vcmask 916480  }
 0x514   : > { %v1774_v37 = vsel %vm3404_vm4, %v1769_v28, %v1771_v33  ;;  %v1775_v38 = vsel %vm3405_vm5, %v1771_v33, %v1773_v20  ;;  %2545 = vmatprep.subr.msk.mxu1 %vm492_vm11, %v1487_v36  ;;  %vm3411_vm4 = vmmov %vm3410_vm3 }
 0x515   : > { %2555 = vmatprep.subr.msk.mxu0 %vm492_vm11, %v1775_v38  ;;  %2546 = vmatpush1.msk.msra.mxu1 %vm492_vm11, %v1486_v34 }
 0x516   : > { %2556 = vmatpush1.msk.msra.mxu0 %vm492_vm11, %v1774_v37  ;;  %v1463_v39 = vpop.permute.xlu0 %1462  ;;  %2547 = vmatmul.mubr.msk.f32.vlgmr.msra.gmra.mrb[2].mxu1 %vm489_vm12, %v1479_v16 }
 0x517   : > { %2557 = vmatmul.mubr.msk.f32.vlgmr.msra.gmra.mrb[4].mxu0 %vm489_vm12, %v1767_v2  ;;  %v1466_v40 = vsel %vm3406_vm6, %v1461_v26, %v1463_v39  ;;  %v1467_v42 = vsel %vm3407_vm7, %v1463_v39, %v1465_v23  ;;  %1637 = vmatprep.mubr.f32.mxu1 %v2749_v17  ;;  %v2059_v50 = vpop.permute.xlu1 %2058 }
 0x518   : > { %v1471_v43 = vsel %vm2977_vm14, %v1466_v40, %v3148_v7  ;;  %v1472_v44 = vsel %vm2981_vm15, %v1467_v42, %v1459_v14  ;;  %1925 = vmatprep.mubr.f32.mxu0 %v2749_v17  ;;  %v1474_v47 = vsel %vm2989_vm0, %v1459_v14, %v1467_v42  ;;  %v1473_v51 = vsel %vm3006_vm1, %v3148_v7, %v1466_v40 }
 0x519   : > { %2548 = vmatprep.subr.msk.mxu1 %vm492_vm11, %v1472_v44  ;;  %v2063_v55 = vsel %vm1070_vm13, %v2059_v50, %v2061_v22  ;;  %v2062_v4 = vsel %vm1070_vm13, %v2057_v30, %v2059_v50 }
 0x51a   : > { %v1739_v45 = vpop.permute.xlu0 %1738  ;;  %2549 = vmatpush1.msk.msra.mxu1 %vm492_vm11, %v1471_v43 }
 0x51b   : > { %2551 = vmatprep.subr.msk.mxu1 %vm492_vm11, %v1474_v47  ;;  %v2041_v1 = vpop.permute.xlu1 %2040 }
 0x51e   : > { %v1741_v52 = vpop.permute.xlu0 %1740  ;;  %2550 = vmatmul.mubr.msk.f32.vlgmr.msra.gmra.mrb[2].mxu1 %vm489_vm12, %v3116_v61 }
 0x51f   : > { %2552 = vmatpush1.msk.msra.mxu1 %vm492_vm11, %v1473_v51  ;;  %1718 = vmatprep.mubr.f32.mxu1 %v2749_v17  ;;  %v1744_v57 = vsel %vm3408_vm8, %v1739_v45, %v1741_v52  ;;  %v1745_v54 = vsel %vm3409_vm2, %v1741_v52, %v1743_v25 }
 0x520   : > { %2565 = vmatprep.subr.msk.mxu1 %vm492_vm11, %v2063_v55 }
 0x522   : > { %v1751_v56 = vpop.permute.xlu0 %1750 }
 0x523   : > { %v1754_v59 = vsel %vm3410_vm3, %v1749_v29, %v1751_v56  ;;  %v1755_v60 = vsel %vm3411_vm4, %v1751_v56, %v1753_v27 }
 0x524   : > { %v1758_v61 = vsel %vm2977_vm14, %v1744_v57, %v1754_v59  ;;  %v1759_v63 = vsel %vm2981_vm15, %v1745_v54, %v1755_v60  ;;  %v1761_v6 = vsel %vm2989_vm0, %v1755_v60, %v1745_v54  ;;  %v1760_v8 = vsel %vm3006_vm1, %v1754_v59, %v1744_v57 }
 0x525   : > { %2558 = vmatprep.subr.msk.mxu0 %vm492_vm11, %v1759_v63 }
 0x526   : > { %v2029_v5 = vpop.permute.xlu0 %2028  ;;  %2553 = vmatmul.mubr.msk.f32.vlgmr.msra.gmra.mrb[2].mxu1 %vm489_vm12, %v1645_v18  ;;  %2559 = vmatpush1.msk.msra.mxu0 %vm492_vm11, %v1758_v61 }
 0x527   : > { %2566 = vmatpush1.msk.msra.mxu1 %vm492_vm11, %v2062_v4  ;;  %2561 = vmatprep.subr.msk.mxu0 %vm492_vm11, %v1761_v6  ;;  %v2033_v10 = vsel %vm1038_vm9, %v2029_v5, %v2031_v3 }
 0x528   : > { %2560 = vmatmul.mubr.msk.f32.vlgmr.msra.gmra.mrb[4].mxu0 %vm489_vm12, %v3125_v46  ;;  %2134 = vmatprep.mubr.f32.mxu1 %v2749_v17  ;;  %v2037_v46 = vpop.permute.xlu1 %2036 }
 0x529   : > { %2562 = vmatpush1.msk.msra.mxu0 %vm492_vm11, %v1760_v8  ;;  %2006 = vmatprep.mubr.f32.mxu0 %v2749_v17 }
 0x52a   : > { %v2039_v9 = vpop.permute.xlu0 %2038  ;;  %2567 = vmatmul.mubr.msk.f32.vlgmr.msra.gmra.mrb[4].mxu1 %vm489_vm12, %v3187_v19 }
 0x52b   : > { %v2043_v11 = vsel %vm1049_vm10, %v2039_v9, %v2041_v1  ;;  %2213 = vmatprep.mubr.f32.mxu1 %v2749_v17  ;;  %v2042_v7 = vsel %vm1049_vm10, %v2037_v46, %v2039_v9 }
 0x52c   : > { %v2047_v12 = vsel %vm2981_vm15, %v2033_v10, %v2043_v11  ;;  %v2049_v16 = vsel %vm2989_vm0, %v2043_v11, %v2033_v10  ;;  %v2221_v48 = vpop.permute.xlu1 %2220 }
 0x52d   : > { %2568 = vmatprep.subr.msk.mxu1 %vm492_vm11, %v2047_v12 }
 0x52e   : > { %v2027_v13 = vpop.permute.xlu0 %2026 }
 0x52f   : > { %v2032_v14 = vsel %vm1038_vm9, %v2027_v13, %v2029_v5 }
 0x530   : > { %v2046_v15 = vsel %vm2977_vm14, %v2032_v14, %v2042_v7  ;;  %v2048_v49 = vsel %vm3006_vm1, %v2042_v7, %v2032_v14 }
 0x531   : > { %2569 = vmatpush1.msk.msra.mxu1 %vm492_vm11, %v2046_v15 }
 0x532   : > { %v1933_v18 = vpop.permute.xlu0 %1932  ;;  %2570 = vmatmul.mubr.msk.f32.vlgmr.msra.gmra.mrb[4].mxu1 %vm489_vm12, %v3132_v62  ;;  %2571 = vmatprep.subr.msk.mxu1 %vm492_vm11, %v2049_v16 }
 0x533   : > { %2563 = vmatmul.mubr.msk.f32.vlgmr.msra.gmra.mrb[4].mxu0 %vm489_vm12, %v1933_v18  ;;  %2572 = vmatpush1.msk.msra.mxu1 %vm492_vm11, %v2048_v49 }
 0x534   : > { %2294 = vmatprep.mubr.f32.mxu1 %v2749_v17 }
 0x53a   : > { %2573 = vmatmul.mubr.msk.f32.vlgmr.msra.gmra.mrb[4].mxu1 %vm489_vm12, %v2221_v48  ;;  %v2310_v48 = vld [vmem:[%s3349_s8] sm:$0xf] }
 0x543   : > { %v1445_v58 = vpop.permute.xlu0 %1444 }
 0x544   : > { %v1452_v20 = vrot.slane %v1445_v58, %v3072_v35 }
 0x5f9   : > { %v1720_v53 = vpop.f32.mrb[2].mxu1 }
 0x5fa   : > { %v1722_v2 = vpop.f32.mrb[3].mxu1 }
 0x5fb   : > { %v1729_v19 = vcombine.low %v1720_v53, %v1722_v2  ;;  %v2372_v53 = vsub.f32 1.0, %v2310_v48 }
 0x5fd   : > { %v1731_v62 = vadd.f32 %v1729_v19, %v1452_v20 }
 0x606   : > { %v2008_v21 = vpop.f32.mrb[4].mxu0 }
 0x607   : > { %v2010_v22 = vpop.f32.mrb[5].mxu0 }
 0x608   : > { %v2017_v23 = vcombine.low %v2008_v21, %v2010_v22 }
 0x60a   : > { %v2019_v24 = vadd.f32 %v2017_v23, %v1731_v62 }
 0x60d   : > { %v2296_v25 = vpop.f32.mrb[4].mxu1 }
 0x60e   : > { %v2298_v26 = vpop.f32.mrb[5].mxu1 }
 0x60f   : > { %v2305_v27 = vcombine.low %v2296_v25, %v2298_v26 }
 0x611   : > { %v3270_v28 = vadd.f32 %v2305_v27, %v2019_v24 }
 0x613   : > { %v2312_v17 = vcombine.high %v3270_v28, %v3270_v28  ;;  %v2314_v29 = vsel %vm492_vm11, %v3270_v28, 0.0 }
 0x615   : > { %v2315_v30 = vsel %vm492_vm11, %v2312_v17, 0.0 }
 0x616   : > { %v2316_v3 = vadd.f32 %v2315_v30, %v2314_v29 }
 0x618   : > { %2317 = vadd.xlane.f32.xlu1 %v2316_v3 }
 0x6a5   : > { %v2318_v32 = vpop.xlane.xlu1 %2317 }
 0x6a6   : > { %v2319_v33 = vmul.f32 0.00390625, %v2318_v32  ;;  %v2340_v43 = vsel %vm492_vm11, %v2318_v32, 0.0 }
 0x6a7   : > { %v2341_v44 = vrot.slane %v2340_v43, 4 }
 0x6a8   : > { %v2327_v34 = vrot.slane %v2319_v33, %v3072_v35 }
 0x6a9   : > { %v2342_v45 = vadd.f32 %v2341_v44, %v2340_v43 }
 0x6aa   : > { %v2329_v36 = vsub.f32 %v3270_v28, %v2327_v34 }
 0x6ab   : > { %v2343_v47 = vrot.slane %v2342_v45, 2 }
 0x6ac   : > { %v2330_v37 = vmul.f32 %v2329_v36, %v2329_v36 }
 0x6ad   : > { %v2344_v50 = vadd.f32 %v2343_v47, %v2342_v45 }
 0x6ae   : > { %v2332_v38 = vcombine.high %v2330_v37, %v2330_v37  ;;  %v2334_v39 = vsel %vm492_vm11, %v2330_v37, 0.0 }
 0x6af   : > { %v2345_v51 = vrot.slane %v2344_v50, 1 }
 0x6b0   : > { %v2335_v40 = vsel %vm492_vm11, %v2332_v38, 0.0 }
 0x6b1   : > { %v2336_v42 = vadd.f32 %v2335_v40, %v2334_v39  ;;  %v2346_v52 = vadd.f32 %v2345_v51, %v2344_v50 }
 0x6b3   : > { %2337 = vadd.xlane.f32.xlu0 %v2336_v42  ;;  %v2347_v55 = vmul.f32 0.0009765625, %v2346_v52 }
 0x6b5   : > { %v2348_v56 = vsub.f32 %v2319_v33, %v2347_v55 }
 0x6b7   : > { %v2356_v57 = vmul.f32 %v2348_v56, %v2348_v56 }
 0x6b9   : > { %v2357_v54 = vsel %vm492_vm11, %v2356_v57, 0.0 }
 0x6ba   : > { %v2358_v59 = vrot.slane %v2357_v54, 4 }
 0x6bc   : > { %v2359_v60 = vadd.f32 %v2358_v59, %v2357_v54 }
 0x6be   : > { %v2360_v61 = vrot.slane %v2359_v60, 2 }
 0x6c0   : > { %v2361_v63 = vadd.f32 %v2360_v61, %v2359_v60 }
 0x6c2   : > { %v2362_v8 = vrot.slane %v2361_v63, 1 }
 0x6c4   : > { %v2363_v12 = vadd.f32 %v2362_v8, %v2361_v63 }
 0x6c6   : > { %v2364_v7 = vmul.f32 256.0, %v2363_v12 }
 0x740   : > { %v2338_v4 = vpop.xlane.xlu0 %2337 }
 0x741   : > { %v2349_v5 = vsel %vm492_vm11, %v2338_v4, 0.0  ;;  %v2339_v10 = vmul.f32 0.003921569, %v2338_v4 }
 0x742   : > { %v2350_v6 = vrot.slane %v2349_v5, 4 }
 0x743   : > { %v2367_v14 = vadd.f32 1e-05, %v2339_v10 }
 0x744   : > { %v2351_v1 = vadd.f32 %v2350_v6, %v2349_v5 }
 0x745   : > { %2669 = vrsqrt.f32 %v2367_v14 }
 0x746   : > { %v2352_v9 = vrot.slane %v2351_v1, 2 }
 0x748   : > { %v2353_v11 = vadd.f32 %v2352_v9, %v2351_v1 }
 0x74a   : > { %v2354_v46 = vrot.slane %v2353_v11, 1 }
 0x74c   : > { %v2355_v13 = vadd.f32 %v2354_v46, %v2353_v11 }
 0x74e   : > { %v2365_v15 = vadd.f32 %v2364_v7, %v2355_v13 }
 0x74f   : > { %v2670_v18 = vpop.eup %2669 }
 0x750   : > { %v2366_v16 = vmul.f32 0.0009775171, %v2365_v15  ;;  %v2371_v2 = vmul.f32 %v2670_v18, %v2310_v48 }
 0x752   : > { %v2369_v49 = vadd.f32 1e-05, %v2366_v16  ;;  %v2376_v21 = vmul.f32 %v2371_v2, %v2319_v33 }
 0x754   : > { %2671 = vrsqrt.f32 %v2369_v49 }
 0x75e   : > { %v2672_v19 = vpop.eup %2671 }
 0x75f   : > { %v2373_v58 = vmul.f32 %v2672_v19, %v2372_v53 }
 0x761   : > { %v2374_v20 = vadd.f32 %v2373_v58, %v2371_v2  ;;  %v2377_v22 = vmul.f32 %v2373_v58, %v2347_v55 }
 0x763   : > { %v2375_v62 = vmul.f32 %v2374_v20, %v3096_v41  ;;  %v2378_v23 = vadd.f32 %v2377_v22, %v2376_v21 }
 0x765   : > { %2383 = vperm.xlu0 %2661, %v2375_v62   ;;  %v2379_v24 = vmul.f32 %v2378_v23, %v3096_v41 }
 0x767   : > { %v2380_v25 = vsub.f32 %v3102_v31, %v2379_v24 }
 0x769   : > { %2396 = vperm.xlu1 %2662, %v2380_v25  }
 0x7e4   : > { %v2384_v26 = vpop.permute.xlu0 %2383 }
 0x7e5   : > { %v2391_v27 = vrot.slane %v2384_v26, %v3072_v35 }
 0x7e7   : > { %v2393_v29 = vmul.f32 %v2391_v27, %v3270_v28 }
 0x7e8   : > { %v2397_v17 = vpop.permute.xlu1 %2396 }
 0x7e9   : > { %v2404_v30 = vrot.slane %v2397_v17, %v3072_v35 }
 0x7eb   : > { %v2406_v3 = vadd.f32 %v2404_v30, %v2393_v29 }
 0x7ed   : > { %v2407_v41 = vadd.f32 %v2406_v3, %v2861_v0 }
 0x7ef   : > { %2408 = vst [vmem:[%s351_s28] sm:$0xff] %v2407_v41 }
 0x7f0   : > { %2686 = shalt.err (!%p2683_p3)
}
 0x7f1   : > { %s2687_s17 = scalar_lea.hbm %s3299_s24, 128  ;;  %s2691_s28 = scalar_lea.hbm %s3350_s9, 256 }
 0x7f2   : > { %p2688_p4 = scmp.ne.s32.totalorder %s3299_s24, %s2687_s17  ;;  %p2692_p9 = scmp.lt.u32.totalorder %s3299_s24, %s3350_s9 }
 0x7f3   : > { %p2693_p10 = scmp.lt.u32.totalorder %s2691_s28, %s2687_s17  ;;  %p2695_p12 = scmp.lt.u32.totalorder %s2687_s17, %s3299_s24 }
 0x7f4   : > { %p2689_p7 = pnand %p2688_p4, %p2843_p5 }
 0x7f5   : > { %p2694_p11 = por %p2693_p10, %p2692_p9 }
 0x7f6   : > { %p2690_p8 = pneg %p2689_p7 }
 0x7f7   : > { %p2696_p13 = por %p2695_p12, %p2694_p11 }
 0x7f9   : > { %p2697_p0 = pnand %p2696_p13, %p2690_p8 }
 0x7fb   : > { %2700 = shalt.err (!%p2697_p0)
}
 0x7fc   : > { %2605 = dma.vmem_to_hbm [thread:$0]  (%p2843_p5), %s3301_s29, 128, %s3299_s24, %s2410_s25  }
 0x7fd PF: > { %p2611_p1 = scmp.ge.s32.totalorder %s2735_s12, 2  ;;  %s2436_s26 = sand.u32 1, %s2723_s30  }
 0x7fe   : > { %s2437_s13 = scalar_lea.sflag [#allocation5], %s2436_s26 }
 0x7ff   : > { %p2608_p2 = pnand %p2611_p1, %p2847_p6 }
 0x801   : > { %2718 = dma.done.wait (!%p2608_p2), %s2437_s13, 128  }
 0x802   : > { %2720 = vsyncadd (!%p2608_p2), %s2437_s13, 4294967168  ;;  %p19_p3 = scmp.ge.s32.totalorder %s2830_s15, 4   ;;  %s3412_s30 = smov %s2727_s10 }
 0x803   : > { %s3413_s10 = smov %s2731_s11  ;;  %s3414_s11 = smov %s2841_s18 }
 0x804   : > { %s3415_s12 = smov %s2830_s15  ;;  %21 = sbr.rel (!%p19_p3) target bundleno = 3 (0x3), region = 101 }
 0x80b   :  { %2442 = vsyncpa [#allocation5], 1 }
 0x80c   :  { %2444 = vsyncpa [#allocation5 + $0x1], 1 }

</bundles_post_ra>
